<compile_context>
chip_gen: v6e
topology: v6e:2x2x1
jax: 0.10.0
libtpu: 0.0.40
codegen_flags: <defaults>
</compile_context>

<pallas_src>
import numpy as np
import jax
import jax.numpy as jnp
from jax import lax
from jax.experimental import pallas as pl
from jax.experimental.pallas import tpu as pltpu

EPS_IN = 1e-5      # InstanceNorm2d default eps
LEAK = 0.2         # LeakyReLU negative slope
KSIZE, STRIDE, PAD = 4, 2, 1
_LANE = 128


def _round_up(x, m):
    return (x + m - 1) // m * m


# ---------------------------------------------------------------------------
# Operator construction + slab packing (runs once on host)
# ---------------------------------------------------------------------------
class _SlabPacker:
    """Packs 2-D operator blocks into one (rows, width) slab.  Every block
    starts at a row offset that is a multiple of 8 and at lane 0, so static
    ref slices inside the kernel stay (8,128)-aligned."""

    def __init__(self, width):
        self.width = width
        self._blocks = []
        self._rows = 0

    def add(self, block):
        block = np.asarray(block, np.float32)
        r, c = block.shape
        assert c <= self.width, (c, self.width)
        padded = np.zeros((_round_up(max(r, 1), 8), self.width), np.float32)
        padded[:r, :c] = block
        off = self._rows
        self._blocks.append(padded)
        self._rows += padded.shape[0]
        return off

    def finish(self, dtype):
        return jnp.asarray(np.concatenate(self._blocks, axis=0), dtype)


def _conv_operator(w, xw, c_in, w_in, c_out):
    """kh-stacked conv operator (4*xw, Wo*C_out): row kh*xw + w_src*c_in + ci
    maps lane (w_src*c_in+ci) of the kh-selected rows to lane (wo*c_out+co).
    Width zero-padding (w_src out of range) is folded in as zero rows."""
    wo_n = w_in // STRIDE
    woc = wo_n * c_out
    B = np.zeros((KSIZE * xw, woc), np.float32)
    for kh in range(KSIZE):
        for wo in range(wo_n):
            for kw in range(KSIZE):
                w_src = STRIDE * wo + kw - PAD
                if 0 <= w_src < w_in:
                    B[kh * xw + w_src * c_in: kh * xw + (w_src + 1) * c_in,
                      wo * c_out:(wo + 1) * c_out] = w[:, :, kh, kw].T
    return B


def _sel_operator(n, h_in, kh):
    """(n*Ho, n*H_in) block-diagonal 0/1 stride-2 row selection for kernel row
    kh.  Out-of-range source rows (conv zero padding) stay all-zero, so stacked
    images never leak into each other."""
    ho = h_in // STRIDE
    S = np.zeros((n * ho, n * h_in), np.float32)
    for img in range(n):
        for r in range(ho):
            h_src = STRIDE * r + kh - PAD
            if 0 <= h_src < h_in:
                S[img * ho + r, img * h_in + h_src] = 1.0
    return S


def build_discriminator_ops(params, n, in_channels, h, w):
    """params: list of (weight (Co,Ci,4,4), bias (Co,)) AFTER spectral norm.
    Returns (wslab bf16, fslab f32, plan, final) for the fused kernel."""
    n_blocks = len(params) - 1
    shapes = []
    h_in, w_in, c_in = h, w, in_channels
    for li in range(n_blocks):
        c_out = int(np.asarray(params[li][0]).shape[0])
        xw = _round_up(w_in * c_in, _LANE) if li == 0 else w_in * c_in
        ho, wo = h_in // STRIDE, w_in // STRIDE
        woc = wo * c_out
        shapes.append((h_in, w_in, c_in, c_out, xw, ho, wo, woc))
        h_in, w_in, c_in = ho, wo, c_out
    h5, w5_sp, c5 = h_in, w_in, c_in
    assert h5 // STRIDE == 1 and w5_sp // STRIDE == 1, \
        "spatial size must reach 2x2 before the final conv (use 32x32 inputs)"
    assert int(np.asarray(params[-1][0]).shape[0]) == 1

    width = _LANE
    for (hi, _wi, _ci, co, _xw, _ho, _wo, woc) in shapes:
        width = max(width, _round_up(max(woc, n * hi, co), _LANE))
    width = max(width, _round_up(max(n * h5, w5_sp * c5), _LANE))

    wpack, fpack = _SlabPacker(width), _SlabPacker(width)
    plan = []
    for li in range(n_blocks):
        wgt = np.asarray(params[li][0], np.float32)
        bias = np.asarray(params[li][1], np.float32)
        h_in, w_in, c_in, c_out, xw, ho, wo, woc = shapes[li]

        b_off = wpack.add(_conv_operator(wgt, xw, c_in, w_in, c_out))
        s_stride = _round_up(n * ho, 8)
        s_off = wpack.add(_sel_operator(n, h_in, 0))
        for kh in range(1, KSIZE):
            wpack.add(_sel_operator(n, h_in, kh))

        bias_off = fpack.add(np.tile(bias, wo)[None, :])
        P = np.zeros((n, n * ho), np.float32)
        for img in range(n):
            P[img, img * ho:(img + 1) * ho] = 1.0
        p_off = fpack.add(P)
        pt_off = fpack.add(P.T)
        T = np.zeros((woc, c_out), np.float32)
        for wo_i in range(wo):
            T[wo_i * c_out:(wo_i + 1) * c_out, :] = np.eye(c_out, dtype=np.float32)
        t_off = fpack.add(T)
        tt_off = fpack.add(T.T)

        plan.append(dict(nh=n * h_in, nho=n * ho, c_out=c_out, xw=xw, woc=woc,
                         b_off=b_off, s_off=s_off, s_stride=s_stride,
                         bias_off=bias_off, p_off=p_off, pt_off=pt_off,
                         t_off=t_off, tt_off=tt_off,
                         inv_p=1.0 / float(ho * wo)))

    for li in range(1, n_blocks):
        assert plan[li]["xw"] == plan[li - 1]["woc"]
        assert plan[li]["nh"] == plan[li - 1]["nho"]

    w5 = np.asarray(params[-1][0], np.float32)
    b5 = np.asarray(params[-1][1], np.float32)
    wfin = np.zeros((h5, w5_sp * c5), np.float32)
    for r in range(h5):
        for col in range(w5_sp):
            wfin[r, col * c5:(col + 1) * c5] = w5[0, :, r + PAD, col + PAD]
    wfin_off = fpack.add(np.tile(wfin, (n, 1)))
    Pf = np.zeros((n, n * h5), np.float32)
    for img in range(n):
        Pf[img, img * h5:(img + 1) * h5] = 1.0
    pf_off = fpack.add(Pf)
    bfin_off = fpack.add(np.full((1, 1), float(b5[0]), np.float32))

    final = dict(nh5=n * h5, w5c5=w5_sp * c5,
                 wfin_off=wfin_off, pf_off=pf_off, bfin_off=bfin_off)
    assert final["w5c5"] == plan[-1]["woc"] and final["nh5"] == plan[-1]["nho"]

    return wpack.finish(jnp.bfloat16), fpack.finish(jnp.float32), tuple(plan), final


# ---------------------------------------------------------------------------
# Fused Pallas kernel (all 5 layers, whole folded batch, one grid step)
# ---------------------------------------------------------------------------
def _make_kernel(plan, final, n):
    def kernel(x_ref, w_ref, f_ref, o_ref):
        act_b = x_ref[...]                                   # (N*H, xw0) bf16
        act_f = None
        for lp in plan:
            nh, nho = lp["nh"], lp["nho"]
            c, xw, woc = lp["c_out"], lp["xw"], lp["woc"]

            # conv(k4,s2,p1): stride-2 row selection hoisted to the (bf16) LHS
            # (exact: 0/1 matrices), then ONE lane-dense bf16 matmul against the
            # kh-stacked operator; kh/kw/c_in contraction accumulates in f32.
            sel = []
            for kh in range(KSIZE):
                r0 = lp["s_off"] + kh * lp["s_stride"]
                xk = jnp.dot(w_ref[r0:r0 + nho, 0:nh], act_b,
                             preferred_element_type=jnp.float32)
                sel.append(xk.astype(jnp.bfloat16))          # exact cast
            xx = jnp.concatenate(sel, axis=1)                # (nho, 4*xw) bf16
            z = jnp.dot(xx, w_ref[lp["b_off"]:lp["b_off"] + KSIZE * xw, 0:woc],
                        preferred_element_type=jnp.float32)  # (nho, woc) f32

            # bias + LeakyReLU(0.2)
            y = z + f_ref[lp["bias_off"]:lp["bias_off"] + 1, 0:woc]
            y = jnp.where(y >= 0.0, y, LEAK * y)

            # InstanceNorm2d (affine=False); per-image stats via 0/1 matmuls
            # (batch is folded along the sublane axis, so plain axis-0 sums
            # would mix images).  sum / sum-sq share one P matmul.
            ycat = jnp.concatenate([y, y * y], axis=1)       # (nho, 2*woc)
            g = jnp.dot(f_ref[lp["p_off"]:lp["p_off"] + n, 0:nho], ycat,
                        preferred_element_type=jnp.float32)  # (n, 2*woc)
            t = f_ref[lp["t_off"]:lp["t_off"] + woc, 0:c]
            mean = jnp.dot(g[:, 0:woc], t,
                           preferred_element_type=jnp.float32) * lp["inv_p"]
            ex2 = jnp.dot(g[:, woc:2 * woc], t,
                          preferred_element_type=jnp.float32) * lp["inv_p"]
            # max(.,0) guards the single-pass variance against cancellation.
            inv = lax.rsqrt(jnp.maximum(ex2 - mean * mean, 0.0) + EPS_IN)
            tt = f_ref[lp["tt_off"]:lp["tt_off"] + c, 0:woc]
            fa = jnp.dot(inv, tt, preferred_element_type=jnp.float32)
            fb = jnp.dot(-mean * inv, tt, preferred_element_type=jnp.float32)
            fcat = jnp.concatenate([fa, fb], axis=1)         # (n, 2*woc)
            ab = jnp.dot(f_ref[lp["pt_off"]:lp["pt_off"] + nho, 0:n], fcat,
                         preferred_element_type=jnp.float32)  # (nho, 2*woc)
            act_f = y * ab[:, 0:woc] + ab[:, woc:2 * woc]    # normalized, f32
            act_b = act_f.astype(jnp.bfloat16)

        # final conv -> one logit per image: VPU multiply + 0/1 per-image sum
        # matmul + lane reduction + sigmoid (kept in f32 like the reference).
        nh5, w5c5 = final["nh5"], final["w5c5"]
        prod = act_f * f_ref[final["wfin_off"]:final["wfin_off"] + nh5, 0:w5c5]
        s = jnp.dot(f_ref[final["pf_off"]:final["pf_off"] + n, 0:nh5], prod,
                    preferred_element_type=jnp.float32)      # (n, w5c5)
        tot = jnp.sum(s, axis=1, keepdims=True)              # (n, 1)
        o_ref[...] = jax.nn.sigmoid(
            tot + f_ref[final["bfin_off"]:final["bfin_off"] + 1, 0:1])
    return kernel


def make_discriminator_forward(plan, final, n, h, w, c_in):
    kernel = _make_kernel(plan, final, n)
    xw0 = plan[0]["xw"]
    nh_rows = n * h

    # Advisory cost so XLA can schedule/overlap this tiny custom call.
    flops = 0
    for lp in plan:
        nho, nh, xw, woc, c = lp["nho"], lp["nh"], lp["xw"], lp["woc"], lp["c_out"]
        flops += 2 * KSIZE * nho * nh * xw        # row-selection matmuls
        flops += 2 * nho * KSIZE * xw * woc       # main conv matmul
        flops += 2 * n * nho * 2 * woc            # per-image sums
        flops += 2 * 2 * n * woc * c              # channel gathers
        flops += 2 * 2 * n * c * woc              # channel broadcasts
        flops += 2 * nho * n * 2 * woc            # row broadcast
        flops += 8 * nho * woc                    # bias / lrelu / normalize
    flops += 4 * n * final["nh5"] * final["w5c5"]
    transcendentals = sum(2 * n * lp["c_out"] for lp in plan) + 2 * n

    def fwd(x_nchw, wslab, fslab):
        # One cheap XLA layout op: NCHW -> (N*H, W*C) bf16 slab, lane-padded to
        # a multiple of 128 so every kernel operand is lane-dense.
        x_rows = jnp.transpose(x_nchw, (0, 2, 3, 1)).reshape(nh_rows, w * c_in)
        if xw0 > w * c_in:
            x_rows = jnp.pad(x_rows, ((0, 0), (0, xw0 - w * c_in)))
        x_rows = x_rows.astype(jnp.bfloat16)

        bytes_accessed = (x_rows.size * 2 + wslab.size * 2 +
                          fslab.size * 4 + n * 4)
        return pl.pallas_call(
            kernel,
            out_shape=jax.ShapeDtypeStruct((n, 1), jnp.float32),
            grid=(1,),   # whole batch folded into one step (sublane axis)
            in_specs=[pl.BlockSpec((nh_rows, xw0), lambda i: (0, 0)),
                      pl.BlockSpec(wslab.shape, lambda i: (0, 0)),
                      pl.BlockSpec(fslab.shape, lambda i: (0, 0))],
            out_specs=pl.BlockSpec((n, 1), lambda i: (0, 0)),
            compiler_params=pltpu.CompilerParams(
                dimension_semantics=("arbitrary",)),
            cost_estimate=pl.CostEstimate(flops=flops,
                                          transcendentals=transcendentals,
                                          bytes_accessed=bytes_accessed),
        )(x_rows, wslab, fslab)

    return jax.jit(fwd)


# ---------------------------------------------------------------------------
# Plain-JAX glue: spectral norm, init, and a pure-XLA reference for checking
# ---------------------------------------------------------------------------
def spectral_normalize(w, key, n_iter=1, eps=1e-12):
    co = w.shape[0]
    w_mat = w.reshape(co, -1)
    u = jax.random.normal(key, (co,), dtype=w.dtype)
    u = u / (jnp.linalg.norm(u) + eps)
    v = None
    for _ in range(n_iter):
        v = w_mat.T @ u
        v = v / (jnp.linalg.norm(v) + eps)
        u = w_mat @ v
        u = u / (jnp.linalg.norm(u) + eps)
    sigma = u @ (w_mat @ v)
    return w / sigma


def init_conv_params(key, c_in, c_out, k=4):
    wk, bk = jax.random.split(key)
    fan_in = c_in * k * k
    bound_w = (6.0 / fan_in) ** 0.5 / 6.0 ** 0.5
    w = jax.random.uniform(wk, (c_out, c_in, k, k), jnp.float32, -bound_w, bound_w)
    bound_b = 1.0 / (fan_in ** 0.5)
    b = jax.random.uniform(bk, (c_out,), jnp.float32, -bound_b, bound_b)
    return w, b


@jax.jit
def _reference_forward(x, params):
    """Pure-XLA reference (same bf16 conv operands as the kernel) for checking."""
    out = x
    n_layers = len(params)
    for li, (wgt, bias) in enumerate(params):
        if li < n_layers - 1:          # blocks use bf16 MXU operands like the kernel
            lhs, rhs = out.astype(jnp.bfloat16), wgt.astype(jnp.bfloat16)
        else:                          # final layer is f32 in the kernel too
            lhs, rhs = out, wgt
        y = lax.conv_general_dilated(
            lhs, rhs, window_strides=(STRIDE, STRIDE),
            padding=((PAD, PAD), (PAD, PAD)),
            dimension_numbers=("NCHW", "OIHW", "NCHW"),
            preferred_element_type=jnp.float32)
        y = y + bias.reshape(1, -1, 1, 1)
        if li < n_layers - 1:
            y = jnp.where(y >= 0.0, y, LEAK * y)
            mean = jnp.mean(y, axis=(2, 3), keepdims=True)
            var = jnp.mean((y - mean) ** 2, axis=(2, 3), keepdims=True)
            y = (y - mean) * lax.rsqrt(var + EPS_IN)
        else:
            y = jax.nn.sigmoid(y)
        out = y
    return out.reshape(-1, 1)


# ---------------------------------------------------------------------------
if __name__ == "__main__":
    # Small config consistent with the module; spatial must be 32 so the five
    # stride-2 convs reach a 1x1 output (32 -> 16 -> 8 -> 4 -> 2 -> 1).
    in_channels, base_channels = 3, 8
    N, H, W = 2, 32, 32

    key = jax.random.PRNGKey(0)
    k_x, k_p = jax.random.split(key)
    x = jax.random.normal(k_x, (N, in_channels, H, W), jnp.float32)

    chans = [(in_channels, base_channels),
             (base_channels, base_channels * 2),
             (base_channels * 2, base_channels * 4),
             (base_channels * 4, base_channels * 8),
             (base_channels * 8, 1)]

    params = []
    for (c_i, c_o), pk in zip(chans, jax.random.split(k_p, len(chans))):
        wk, uk = jax.random.split(pk)
        wgt, b = init_conv_params(wk, c_i, c_o)
        params.append((spectral_normalize(wgt, uk, n_iter=1), b))

    wslab, fslab, plan, final = build_discriminator_ops(params, N, in_channels, H, W)
    fwd = make_discriminator_forward(plan, final, N, H, W, in_channels)

    out = jax.block_until_ready(fwd(x, wslab, fslab))
    assert out.shape == (N, 1), out.shape
    assert bool(jnp.all((out >= 0.0) & (out <= 1.0)))

    # Numerical check against a pure-XLA reference of the same module.
    ref = jax.block_until_ready(_reference_forward(x, params))
    np.testing.assert_allclose(np.asarray(out), np.asarray(ref),
                               rtol=0.0, atol=1e-2)

    print("KERNEL_OK")
</pallas_src>

<mosaic_0001>
module attributes {stable_mosaic.version = 11 : i64} {
  func.func @kernel(%arg0: i32, %arg1: memref<64x128xbf16, #tpu.memory_space<vmem>>, %arg2: memref<2304x128xbf16, #tpu.memory_space<vmem>>, %arg3: memref<784x128xf32, #tpu.memory_space<vmem>>, %arg4: memref<2x1xf32, #tpu.memory_space<vmem>>) attributes {dimension_semantics = [#tpu.dimension_semantics<arbitrary>], iteration_bounds = array<i64: 1>, scalar_prefetch = 0 : i64, scratch_operands = 0 : i64, tpu.core_type = #tpu.core_type<tc>, window_params = [{pipeline_mode = #tpu.pipeline_mode<synchronous>, transform_indices = @transform_0, window_bounds = array<i64: 64, 128>}, {pipeline_mode = #tpu.pipeline_mode<synchronous>, transform_indices = @transform_1, window_bounds = array<i64: 2304, 128>}, {pipeline_mode = #tpu.pipeline_mode<synchronous>, transform_indices = @transform_2, window_bounds = array<i64: 784, 128>}, {pipeline_mode = #tpu.pipeline_mode<synchronous>, transform_indices = @transform_3, window_bounds = array<i64: 2, 1>}]} {
    %c0 = arith.constant 0 : index
    %c0_0 = arith.constant 0 : index
    %0 = vector.load %arg1[%c0, %c0_0] : memref<64x128xbf16, #tpu.memory_space<vmem>>, vector<64x128xbf16>
    %c512 = arith.constant 512 : index
    %c0_1 = arith.constant 0 : index
    %1 = vector.load %arg2[%c512, %c0_1] : memref<2304x128xbf16, #tpu.memory_space<vmem>>, vector<32x64xbf16>
    %cst = arith.constant dense<0.000000e+00> : vector<32x128xf32>
    %2 = tpu.matmul %1, %0, %cst {dimension_numbers = #tpu.dot_dimension_numbers<[1], [0], [0], [1], [0, 0, 1, 1], [], []>} : vector<32x64xbf16>, vector<64x128xbf16>, vector<32x128xf32> -> vector<32x128xf32>
    %3 = arith.truncf %2 : vector<32x128xf32> to vector<32x128xbf16>
    %c544 = arith.constant 544 : index
    %c0_2 = arith.constant 0 : index
    %4 = vector.load %arg2[%c544, %c0_2] : memref<2304x128xbf16, #tpu.memory_space<vmem>>, vector<32x64xbf16>
    %cst_3 = arith.constant dense<0.000000e+00> : vector<32x128xf32>
    %5 = tpu.matmul %4, %0, %cst_3 {dimension_numbers = #tpu.dot_dimension_numbers<[1], [0], [0], [1], [0, 0, 1, 1], [], []>} : vector<32x64xbf16>, vector<64x128xbf16>, vector<32x128xf32> -> vector<32x128xf32>
    %6 = arith.truncf %5 : vector<32x128xf32> to vector<32x128xbf16>
    %c576 = arith.constant 576 : index
    %c0_4 = arith.constant 0 : index
    %7 = vector.load %arg2[%c576, %c0_4] : memref<2304x128xbf16, #tpu.memory_space<vmem>>, vector<32x64xbf16>
    %cst_5 = arith.constant dense<0.000000e+00> : vector<32x128xf32>
    %8 = tpu.matmul %7, %0, %cst_5 {dimension_numbers = #tpu.dot_dimension_numbers<[1], [0], [0], [1], [0, 0, 1, 1], [], []>} : vector<32x64xbf16>, vector<64x128xbf16>, vector<32x128xf32> -> vector<32x128xf32>
    %9 = arith.truncf %8 : vector<32x128xf32> to vector<32x128xbf16>
    %c608 = arith.constant 608 : index
    %c0_6 = arith.constant 0 : index
    %10 = vector.load %arg2[%c608, %c0_6] : memref<2304x128xbf16, #tpu.memory_space<vmem>>, vector<32x64xbf16>
    %cst_7 = arith.constant dense<0.000000e+00> : vector<32x128xf32>
    %11 = tpu.matmul %10, %0, %cst_7 {dimension_numbers = #tpu.dot_dimension_numbers<[1], [0], [0], [1], [0, 0, 1, 1], [], []>} : vector<32x64xbf16>, vector<64x128xbf16>, vector<32x128xf32> -> vector<32x128xf32>
    %12 = arith.truncf %11 : vector<32x128xf32> to vector<32x128xbf16>
    %13 = tpu.concatenate %3, %6, %9, %12 in 1 : vector<32x128xbf16>, vector<32x128xbf16>, vector<32x128xbf16>, vector<32x128xbf16> -> vector<32x512xbf16>
    %c0_8 = arith.constant 0 : index
    %c0_9 = arith.constant 0 : index
    %14 = vector.load %arg2[%c0_8, %c0_9] : memref<2304x128xbf16, #tpu.memory_space<vmem>>, vector<512x128xbf16>
    %cst_10 = arith.constant dense<0.000000e+00> : vector<32x128xf32>
    %15 = tpu.matmul %13, %14, %cst_10 {dimension_numbers = #tpu.dot_dimension_numbers<[1], [0], [0], [1], [0, 0, 1, 1], [], []>} : vector<32x512xbf16>, vector<512x128xbf16>, vector<32x128xf32> -> vector<32x128xf32>
    %c0_11 = arith.constant 0 : index
    %c0_12 = arith.constant 0 : index
    %16 = vector.load %arg3[%c0_11, %c0_12] : memref<784x128xf32, #tpu.memory_space<vmem>>, vector<1x128xf32>
    %17 = vector.broadcast %16 : vector<1x128xf32> to vector<32x128xf32>
    %18 = arith.addf %15, %17 : vector<32x128xf32>
    %cst_13 = arith.constant 0.000000e+00 : f32
    %19 = vector.broadcast %cst_13 : f32 to vector<32x128xf32>
    %20 = arith.cmpf oge, %18, %19 : vector<32x128xf32>
    %cst_14 = arith.constant 2.000000e-01 : f32
    %21 = vector.broadcast %cst_14 : f32 to vector<32x128xf32>
    %22 = arith.mulf %21, %18 : vector<32x128xf32>
    %23 = arith.select %20, %18, %22 : vector<32x128xi1>, vector<32x128xf32>
    %24 = arith.mulf %23, %23 : vector<32x128xf32>
    %25 = tpu.concatenate %23, %24 in 1 : vector<32x128xf32>, vector<32x128xf32> -> vector<32x256xf32>
    %c8 = arith.constant 8 : index
    %c0_15 = arith.constant 0 : index
    %26 = vector.load %arg3[%c8, %c0_15] : memref<784x128xf32, #tpu.memory_space<vmem>>, vector<2x32xf32>
    %cst_16 = arith.constant dense<0.000000e+00> : vector<2x256xf32>
    %27 = tpu.matmul %26, %25, %cst_16 {dimension_numbers = #tpu.dot_dimension_numbers<[1], [0], [0], [1], [0, 0, 1, 1], [], []>} : vector<2x32xf32>, vector<32x256xf32>, vector<2x256xf32> -> vector<2x256xf32>
    %c48 = arith.constant 48 : index
    %c0_17 = arith.constant 0 : index
    %28 = vector.load %arg3[%c48, %c0_17] : memref<784x128xf32, #tpu.memory_space<vmem>>, vector<128x8xf32>
    %29 = vector.extract_strided_slice %27 {offsets = [0, 0], sizes = [2, 128], strides = [1, 1]} : vector<2x256xf32> to vector<2x128xf32>
    %cst_18 = arith.constant dense<0.000000e+00> : vector<2x8xf32>
    %30 = tpu.matmul %29, %28, %cst_18 {dimension_numbers = #tpu.dot_dimension_numbers<[1], [0], [0], [1], [0, 0, 1, 1], [], []>} : vector<2x128xf32>, vector<128x8xf32>, vector<2x8xf32> -> vector<2x8xf32>
    %cst_19 = arith.constant 3.906250e-03 : f32
    %31 = vector.broadcast %cst_19 : f32 to vector<2x8xf32>
    %32 = arith.mulf %30, %31 : vector<2x8xf32>
    %33 = vector.extract_strided_slice %27 {offsets = [0, 128], sizes = [2, 128], strides = [1, 1]} : vector<2x256xf32> to vector<2x128xf32>
    %cst_20 = arith.constant dense<0.000000e+00> : vector<2x8xf32>
    %34 = tpu.matmul %33, %28, %cst_20 {dimension_numbers = #tpu.dot_dimension_numbers<[1], [0], [0], [1], [0, 0, 1, 1], [], []>} : vector<2x128xf32>, vector<128x8xf32>, vector<2x8xf32> -> vector<2x8xf32>
    %cst_21 = arith.constant 3.906250e-03 : f32
    %35 = vector.broadcast %cst_21 : f32 to vector<2x8xf32>
    %36 = arith.mulf %34, %35 : vector<2x8xf32>
    %37 = arith.mulf %32, %32 : vector<2x8xf32>
    %38 = arith.subf %36, %37 : vector<2x8xf32>
    %cst_22 = arith.constant 0.000000e+00 : f32
    %39 = vector.broadcast %cst_22 : f32 to vector<2x8xf32>
    %40 = arith.maximumf %38, %39 : vector<2x8xf32>
    %cst_23 = arith.constant 9.99999974E-6 : f32
    %41 = vector.broadcast %cst_23 : f32 to vector<2x8xf32>
    %42 = arith.addf %40, %41 : vector<2x8xf32>
    %43 = math.rsqrt %42 : vector<2x8xf32>
    %c176 = arith.constant 176 : index
    %c0_24 = arith.constant 0 : index
    %44 = vector.load %arg3[%c176, %c0_24] : memref<784x128xf32, #tpu.memory_space<vmem>>, vector<8x128xf32>
    %cst_25 = arith.constant dense<0.000000e+00> : vector<2x128xf32>
    %45 = tpu.matmul %43, %44, %cst_25 {dimension_numbers = #tpu.dot_dimension_numbers<[1], [0], [0], [1], [0, 0, 1, 1], [], []>} : vector<2x8xf32>, vector<8x128xf32>, vector<2x128xf32> -> vector<2x128xf32>
    %cst_26 = arith.constant 0.000000e+00 : f32
    %46 = vector.broadcast %cst_26 : f32 to vector<2x8xf32>
    %47 = arith.subf %46, %32 : vector<2x8xf32>
    %48 = arith.mulf %47, %43 : vector<2x8xf32>
    %cst_27 = arith.constant dense<0.000000e+00> : vector<2x128xf32>
    %49 = tpu.matmul %48, %44, %cst_27 {dimension_numbers = #tpu.dot_dimension_numbers<[1], [0], [0], [1], [0, 0, 1, 1], [], []>} : vector<2x8xf32>, vector<8x128xf32>, vector<2x128xf32> -> vector<2x128xf32>
    %50 = tpu.concatenate %45, %49 in 1 : vector<2x128xf32>, vector<2x128xf32> -> vector<2x256xf32>
    %c16 = arith.constant 16 : index
    %c0_28 = arith.constant 0 : index
    %51 = vector.load %arg3[%c16, %c0_28] : memref<784x128xf32, #tpu.memory_space<vmem>>, vector<32x2xf32>
    %cst_29 = arith.constant dense<0.000000e+00> : vector<32x256xf32>
    %52 = tpu.matmul %51, %50, %cst_29 {dimension_numbers = #tpu.dot_dimension_numbers<[1], [0], [0], [1], [0, 0, 1, 1], [], []>} : vector<32x2xf32>, vector<2x256xf32>, vector<32x256xf32> -> vector<32x256xf32>
    %53 = vector.extract_strided_slice %52 {offsets = [0, 0], sizes = [32, 128], strides = [1, 1]} : vector<32x256xf32> to vector<32x128xf32>
    %54 = arith.mulf %23, %53 : vector<32x128xf32>
    %55 = vector.extract_strided_slice %52 {offsets = [0, 128], sizes = [32, 128], strides = [1, 1]} : vector<32x256xf32> to vector<32x128xf32>
    %56 = arith.addf %54, %55 : vector<32x128xf32>
    %57 = arith.truncf %56 : vector<32x128xf32> to vector<32x128xbf16>
    %c1152 = arith.constant 1152 : index
    %c0_30 = arith.constant 0 : index
    %58 = vector.load %arg2[%c1152, %c0_30] : memref<2304x128xbf16, #tpu.memory_space<vmem>>, vector<16x32xbf16>
    %cst_31 = arith.constant dense<0.000000e+00> : vector<16x128xf32>
    %59 = tpu.matmul %58, %57, %cst_31 {dimension_numbers = #tpu.dot_dimension_numbers<[1], [0], [0], [1], [0, 0, 1, 1], [], []>} : vector<16x32xbf16>, vector<32x128xbf16>, vector<16x128xf32> -> vector<16x128xf32>
    %60 = arith.truncf %59 : vector<16x128xf32> to vector<16x128xbf16>
    %c1168 = arith.constant 1168 : index
    %c0_32 = arith.constant 0 : index
    %61 = vector.load %arg2[%c1168, %c0_32] : memref<2304x128xbf16, #tpu.memory_space<vmem>>, vector<16x32xbf16>
    %cst_33 = arith.constant dense<0.000000e+00> : vector<16x128xf32>
    %62 = tpu.matmul %61, %57, %cst_33 {dimension_numbers = #tpu.dot_dimension_numbers<[1], [0], [0], [1], [0, 0, 1, 1], [], []>} : vector<16x32xbf16>, vector<32x128xbf16>, vector<16x128xf32> -> vector<16x128xf32>
    %63 = arith.truncf %62 : vector<16x128xf32> to vector<16x128xbf16>
    %c1184 = arith.constant 1184 : index
    %c0_34 = arith.constant 0 : index
    %64 = vector.load %arg2[%c1184, %c0_34] : memref<2304x128xbf16, #tpu.memory_space<vmem>>, vector<16x32xbf16>
    %cst_35 = arith.constant dense<0.000000e+00> : vector<16x128xf32>
    %65 = tpu.matmul %64, %57, %cst_35 {dimension_numbers = #tpu.dot_dimension_numbers<[1], [0], [0], [1], [0, 0, 1, 1], [], []>} : vector<16x32xbf16>, vector<32x128xbf16>, vector<16x128xf32> -> vector<16x128xf32>
    %66 = arith.truncf %65 : vector<16x128xf32> to vector<16x128xbf16>
    %c1200 = arith.constant 1200 : index
    %c0_36 = arith.constant 0 : index
    %67 = vector.load %arg2[%c1200, %c0_36] : memref<2304x128xbf16, #tpu.memory_space<vmem>>, vector<16x32xbf16>
    %cst_37 = arith.constant dense<0.000000e+00> : vector<16x128xf32>
    %68 = tpu.matmul %67, %57, %cst_37 {dimension_numbers = #tpu.dot_dimension_numbers<[1], [0], [0], [1], [0, 0, 1, 1], [], []>} : vector<16x32xbf16>, vector<32x128xbf16>, vector<16x128xf32> -> vector<16x128xf32>
    %69 = arith.truncf %68 : vector<16x128xf32> to vector<16x128xbf16>
    %70 = tpu.concatenate %60, %63, %66, %69 in 1 : vector<16x128xbf16>, vector<16x128xbf16>, vector<16x128xbf16>, vector<16x128xbf16> -> vector<16x512xbf16>
    %c640 = arith.constant 640 : index
    %c0_38 = arith.constant 0 : index
    %71 = vector.load %arg2[%c640, %c0_38] : memref<2304x128xbf16, #tpu.memory_space<vmem>>, vector<512x128xbf16>
    %cst_39 = arith.constant dense<0.000000e+00> : vector<16x128xf32>
    %72 = tpu.matmul %70, %71, %cst_39 {dimension_numbers = #tpu.dot_dimension_numbers<[1], [0], [0], [1], [0, 0, 1, 1], [], []>} : vector<16x512xbf16>, vector<512x128xbf16>, vector<16x128xf32> -> vector<16x128xf32>
    %c184 = arith.constant 184 : index
    %c0_40 = arith.constant 0 : index
    %73 = vector.load %arg3[%c184, %c0_40] : memref<784x128xf32, #tpu.memory_space<vmem>>, vector<1x128xf32>
    %74 = vector.broadcast %73 : vector<1x128xf32> to vector<16x128xf32>
    %75 = arith.addf %72, %74 : vector<16x128xf32>
    %cst_41 = arith.constant 0.000000e+00 : f32
    %76 = vector.broadcast %cst_41 : f32 to vector<16x128xf32>
    %77 = arith.cmpf oge, %75, %76 : vector<16x128xf32>
    %cst_42 = arith.constant 2.000000e-01 : f32
    %78 = vector.broadcast %cst_42 : f32 to vector<16x128xf32>
    %79 = arith.mulf %78, %75 : vector<16x128xf32>
    %80 = arith.select %77, %75, %79 : vector<16x128xi1>, vector<16x128xf32>
    %81 = arith.mulf %80, %80 : vector<16x128xf32>
    %82 = tpu.concatenate %80, %81 in 1 : vector<16x128xf32>, vector<16x128xf32> -> vector<16x256xf32>
    %c192 = arith.constant 192 : index
    %c0_43 = arith.constant 0 : index
    %83 = vector.load %arg3[%c192, %c0_43] : memref<784x128xf32, #tpu.memory_space<vmem>>, vector<2x16xf32>
    %cst_44 = arith.constant dense<0.000000e+00> : vector<2x256xf32>
    %84 = tpu.matmul %83, %82, %cst_44 {dimension_numbers = #tpu.dot_dimension_numbers<[1], [0], [0], [1], [0, 0, 1, 1], [], []>} : vector<2x16xf32>, vector<16x256xf32>, vector<2x256xf32> -> vector<2x256xf32>
    %c216 = arith.constant 216 : index
    %c0_45 = arith.constant 0 : index
    %85 = vector.load %arg3[%c216, %c0_45] : memref<784x128xf32, #tpu.memory_space<vmem>>, vector<128x16xf32>
    %86 = vector.extract_strided_slice %84 {offsets = [0, 0], sizes = [2, 128], strides = [1, 1]} : vector<2x256xf32> to vector<2x128xf32>
    %cst_46 = arith.constant dense<0.000000e+00> : vector<2x16xf32>
    %87 = tpu.matmul %86, %85, %cst_46 {dimension_numbers = #tpu.dot_dimension_numbers<[1], [0], [0], [1], [0, 0, 1, 1], [], []>} : vector<2x128xf32>, vector<128x16xf32>, vector<2x16xf32> -> vector<2x16xf32>
    %cst_47 = arith.constant 1.562500e-02 : f32
    %88 = vector.broadcast %cst_47 : f32 to vector<2x16xf32>
    %89 = arith.mulf %87, %88 : vector<2x16xf32>
    %90 = vector.extract_strided_slice %84 {offsets = [0, 128], sizes = [2, 128], strides = [1, 1]} : vector<2x256xf32> to vector<2x128xf32>
    %cst_48 = arith.constant dense<0.000000e+00> : vector<2x16xf32>
    %91 = tpu.matmul %90, %85, %cst_48 {dimension_numbers = #tpu.dot_dimension_numbers<[1], [0], [0], [1], [0, 0, 1, 1], [], []>} : vector<2x128xf32>, vector<128x16xf32>, vector<2x16xf32> -> vector<2x16xf32>
    %cst_49 = arith.constant 1.562500e-02 : f32
    %92 = vector.broadcast %cst_49 : f32 to vector<2x16xf32>
    %93 = arith.mulf %91, %92 : vector<2x16xf32>
    %94 = arith.mulf %89, %89 : vector<2x16xf32>
    %95 = arith.subf %93, %94 : vector<2x16xf32>
    %cst_50 = arith.constant 0.000000e+00 : f32
    %96 = vector.broadcast %cst_50 : f32 to vector<2x16xf32>
    %97 = arith.maximumf %95, %96 : vector<2x16xf32>
    %cst_51 = arith.constant 9.99999974E-6 : f32
    %98 = vector.broadcast %cst_51 : f32 to vector<2x16xf32>
    %99 = arith.addf %97, %98 : vector<2x16xf32>
    %100 = math.rsqrt %99 : vector<2x16xf32>
    %c344 = arith.constant 344 : index
    %c0_52 = arith.constant 0 : index
    %101 = vector.load %arg3[%c344, %c0_52] : memref<784x128xf32, #tpu.memory_space<vmem>>, vector<16x128xf32>
    %cst_53 = arith.constant dense<0.000000e+00> : vector<2x128xf32>
    %102 = tpu.matmul %100, %101, %cst_53 {dimension_numbers = #tpu.dot_dimension_numbers<[1], [0], [0], [1], [0, 0, 1, 1], [], []>} : vector<2x16xf32>, vector<16x128xf32>, vector<2x128xf32> -> vector<2x128xf32>
    %cst_54 = arith.constant 0.000000e+00 : f32
    %103 = vector.broadcast %cst_54 : f32 to vector<2x16xf32>
    %104 = arith.subf %103, %89 : vector<2x16xf32>
    %105 = arith.mulf %104, %100 : vector<2x16xf32>
    %cst_55 = arith.constant dense<0.000000e+00> : vector<2x128xf32>
    %106 = tpu.matmul %105, %101, %cst_55 {dimension_numbers = #tpu.dot_dimension_numbers<[1], [0], [0], [1], [0, 0, 1, 1], [], []>} : vector<2x16xf32>, vector<16x128xf32>, vector<2x128xf32> -> vector<2x128xf32>
    %107 = tpu.concatenate %102, %106 in 1 : vector<2x128xf32>, vector<2x128xf32> -> vector<2x256xf32>
    %c200 = arith.constant 200 : index
    %c0_56 = arith.constant 0 : index
    %108 = vector.load %arg3[%c200, %c0_56] : memref<784x128xf32, #tpu.memory_space<vmem>>, vector<16x2xf32>
    %cst_57 = arith.constant dense<0.000000e+00> : vector<16x256xf32>
    %109 = tpu.matmul %108, %107, %cst_57 {dimension_numbers = #tpu.dot_dimension_numbers<[1], [0], [0], [1], [0, 0, 1, 1], [], []>} : vector<16x2xf32>, vector<2x256xf32>, vector<16x256xf32> -> vector<16x256xf32>
    %110 = vector.extract_strided_slice %109 {offsets = [0, 0], sizes = [16, 128], strides = [1, 1]} : vector<16x256xf32> to vector<16x128xf32>
    %111 = arith.mulf %80, %110 : vector<16x128xf32>
    %112 = vector.extract_strided_slice %109 {offsets = [0, 128], sizes = [16, 128], strides = [1, 1]} : vector<16x256xf32> to vector<16x128xf32>
    %113 = arith.addf %111, %112 : vector<16x128xf32>
    %114 = arith.truncf %113 : vector<16x128xf32> to vector<16x128xbf16>
    %c1728 = arith.constant 1728 : index
    %c0_58 = arith.constant 0 : index
    %115 = vector.load %arg2[%c1728, %c0_58] : memref<2304x128xbf16, #tpu.memory_space<vmem>>, vector<8x16xbf16>
    %cst_59 = arith.constant dense<0.000000e+00> : vector<8x128xf32>
    %116 = tpu.matmul %115, %114, %cst_59 {dimension_numbers = #tpu.dot_dimension_numbers<[1], [0], [0], [1], [0, 0, 1, 1], [], []>} : vector<8x16xbf16>, vector<16x128xbf16>, vector<8x128xf32> -> vector<8x128xf32>
    %117 = arith.truncf %116 : vector<8x128xf32> to vector<8x128xbf16>
    %c1736 = arith.constant 1736 : index
    %c0_60 = arith.constant 0 : index
    %118 = vector.load %arg2[%c1736, %c0_60] : memref<2304x128xbf16, #tpu.memory_space<vmem>>, vector<8x16xbf16>
    %cst_61 = arith.constant dense<0.000000e+00> : vector<8x128xf32>
    %119 = tpu.matmul %118, %114, %cst_61 {dimension_numbers = #tpu.dot_dimension_numbers<[1], [0], [0], [1], [0, 0, 1, 1], [], []>} : vector<8x16xbf16>, vector<16x128xbf16>, vector<8x128xf32> -> vector<8x128xf32>
    %120 = arith.truncf %119 : vector<8x128xf32> to vector<8x128xbf16>
    %c1744 = arith.constant 1744 : index
    %c0_62 = arith.constant 0 : index
    %121 = vector.load %arg2[%c1744, %c0_62] : memref<2304x128xbf16, #tpu.memory_space<vmem>>, vector<8x16xbf16>
    %cst_63 = arith.constant dense<0.000000e+00> : vector<8x128xf32>
    %122 = tpu.matmul %121, %114, %cst_63 {dimension_numbers = #tpu.dot_dimension_numbers<[1], [0], [0], [1], [0, 0, 1, 1], [], []>} : vector<8x16xbf16>, vector<16x128xbf16>, vector<8x128xf32> -> vector<8x128xf32>
    %123 = arith.truncf %122 : vector<8x128xf32> to vector<8x128xbf16>
    %c1752 = arith.constant 1752 : index
    %c0_64 = arith.constant 0 : index
    %124 = vector.load %arg2[%c1752, %c0_64] : memref<2304x128xbf16, #tpu.memory_space<vmem>>, vector<8x16xbf16>
    %cst_65 = arith.constant dense<0.000000e+00> : vector<8x128xf32>
    %125 = tpu.matmul %124, %114, %cst_65 {dimension_numbers = #tpu.dot_dimension_numbers<[1], [0], [0], [1], [0, 0, 1, 1], [], []>} : vector<8x16xbf16>, vector<16x128xbf16>, vector<8x128xf32> -> vector<8x128xf32>
    %126 = arith.truncf %125 : vector<8x128xf32> to vector<8x128xbf16>
    %127 = tpu.concatenate %117, %120, %123, %126 in 1 : vector<8x128xbf16>, vector<8x128xbf16>, vector<8x128xbf16>, vector<8x128xbf16> -> vector<8x512xbf16>
    %c1216 = arith.constant 1216 : index
    %c0_66 = arith.constant 0 : index
    %128 = vector.load %arg2[%c1216, %c0_66] : memref<2304x128xbf16, #tpu.memory_space<vmem>>, vector<512x128xbf16>
    %cst_67 = arith.constant dense<0.000000e+00> : vector<8x128xf32>
    %129 = tpu.matmul %127, %128, %cst_67 {dimension_numbers = #tpu.dot_dimension_numbers<[1], [0], [0], [1], [0, 0, 1, 1], [], []>} : vector<8x512xbf16>, vector<512x128xbf16>, vector<8x128xf32> -> vector<8x128xf32>
    %c360 = arith.constant 360 : index
    %c0_68 = arith.constant 0 : index
    %130 = vector.load %arg3[%c360, %c0_68] : memref<784x128xf32, #tpu.memory_space<vmem>>, vector<1x128xf32>
    %131 = vector.broadcast %130 : vector<1x128xf32> to vector<8x128xf32>
    %132 = arith.addf %129, %131 : vector<8x128xf32>
    %cst_69 = arith.constant 0.000000e+00 : f32
    %133 = vector.broadcast %cst_69 : f32 to vector<8x128xf32>
    %134 = arith.cmpf oge, %132, %133 : vector<8x128xf32>
    %cst_70 = arith.constant 2.000000e-01 : f32
    %135 = vector.broadcast %cst_70 : f32 to vector<8x128xf32>
    %136 = arith.mulf %135, %132 : vector<8x128xf32>
    %137 = arith.select %134, %132, %136 : vector<8x128xi1>, vector<8x128xf32>
    %138 = arith.mulf %137, %137 : vector<8x128xf32>
    %139 = tpu.concatenate %137, %138 in 1 : vector<8x128xf32>, vector<8x128xf32> -> vector<8x256xf32>
    %c368 = arith.constant 368 : index
    %c0_71 = arith.constant 0 : index
    %140 = vector.load %arg3[%c368, %c0_71] : memref<784x128xf32, #tpu.memory_space<vmem>>, vector<2x8xf32>
    %cst_72 = arith.constant dense<0.000000e+00> : vector<2x256xf32>
    %141 = tpu.matmul %140, %139, %cst_72 {dimension_numbers = #tpu.dot_dimension_numbers<[1], [0], [0], [1], [0, 0, 1, 1], [], []>} : vector<2x8xf32>, vector<8x256xf32>, vector<2x256xf32> -> vector<2x256xf32>
    %c384 = arith.constant 384 : index
    %c0_73 = arith.constant 0 : index
    %142 = vector.load %arg3[%c384, %c0_73] : memref<784x128xf32, #tpu.memory_space<vmem>>, vector<128x32xf32>
    %143 = vector.extract_strided_slice %141 {offsets = [0, 0], sizes = [2, 128], strides = [1, 1]} : vector<2x256xf32> to vector<2x128xf32>
    %cst_74 = arith.constant dense<0.000000e+00> : vector<2x32xf32>
    %144 = tpu.matmul %143, %142, %cst_74 {dimension_numbers = #tpu.dot_dimension_numbers<[1], [0], [0], [1], [0, 0, 1, 1], [], []>} : vector<2x128xf32>, vector<128x32xf32>, vector<2x32xf32> -> vector<2x32xf32>
    %cst_75 = arith.constant 6.250000e-02 : f32
    %145 = vector.broadcast %cst_75 : f32 to vector<2x32xf32>
    %146 = arith.mulf %144, %145 : vector<2x32xf32>
    %147 = vector.extract_strided_slice %141 {offsets = [0, 128], sizes = [2, 128], strides = [1, 1]} : vector<2x256xf32> to vector<2x128xf32>
    %cst_76 = arith.constant dense<0.000000e+00> : vector<2x32xf32>
    %148 = tpu.matmul %147, %142, %cst_76 {dimension_numbers = #tpu.dot_dimension_numbers<[1], [0], [0], [1], [0, 0, 1, 1], [], []>} : vector<2x128xf32>, vector<128x32xf32>, vector<2x32xf32> -> vector<2x32xf32>
    %cst_77 = arith.constant 6.250000e-02 : f32
    %149 = vector.broadcast %cst_77 : f32 to vector<2x32xf32>
    %150 = arith.mulf %148, %149 : vector<2x32xf32>
    %151 = arith.mulf %146, %146 : vector<2x32xf32>
    %152 = arith.subf %150, %151 : vector<2x32xf32>
    %cst_78 = arith.constant 0.000000e+00 : f32
    %153 = vector.broadcast %cst_78 : f32 to vector<2x32xf32>
    %154 = arith.maximumf %152, %153 : vector<2x32xf32>
    %cst_79 = arith.constant 9.99999974E-6 : f32
    %155 = vector.broadcast %cst_79 : f32 to vector<2x32xf32>
    %156 = arith.addf %154, %155 : vector<2x32xf32>
    %157 = math.rsqrt %156 : vector<2x32xf32>
    %c512_80 = arith.constant 512 : index
    %c0_81 = arith.constant 0 : index
    %158 = vector.load %arg3[%c512_80, %c0_81] : memref<784x128xf32, #tpu.memory_space<vmem>>, vector<32x128xf32>
    %cst_82 = arith.constant dense<0.000000e+00> : vector<2x128xf32>
    %159 = tpu.matmul %157, %158, %cst_82 {dimension_numbers = #tpu.dot_dimension_numbers<[1], [0], [0], [1], [0, 0, 1, 1], [], []>} : vector<2x32xf32>, vector<32x128xf32>, vector<2x128xf32> -> vector<2x128xf32>
    %cst_83 = arith.constant 0.000000e+00 : f32
    %160 = vector.broadcast %cst_83 : f32 to vector<2x32xf32>
    %161 = arith.subf %160, %146 : vector<2x32xf32>
    %162 = arith.mulf %161, %157 : vector<2x32xf32>
    %cst_84 = arith.constant dense<0.000000e+00> : vector<2x128xf32>
    %163 = tpu.matmul %162, %158, %cst_84 {dimension_numbers = #tpu.dot_dimension_numbers<[1], [0], [0], [1], [0, 0, 1, 1], [], []>} : vector<2x32xf32>, vector<32x128xf32>, vector<2x128xf32> -> vector<2x128xf32>
    %164 = tpu.concatenate %159, %163 in 1 : vector<2x128xf32>, vector<2x128xf32> -> vector<2x256xf32>
    %c376 = arith.constant 376 : index
    %c0_85 = arith.constant 0 : index
    %165 = vector.load %arg3[%c376, %c0_85] : memref<784x128xf32, #tpu.memory_space<vmem>>, vector<8x2xf32>
    %cst_86 = arith.constant dense<0.000000e+00> : vector<8x256xf32>
    %166 = tpu.matmul %165, %164, %cst_86 {dimension_numbers = #tpu.dot_dimension_numbers<[1], [0], [0], [1], [0, 0, 1, 1], [], []>} : vector<8x2xf32>, vector<2x256xf32>, vector<8x256xf32> -> vector<8x256xf32>
    %167 = vector.extract_strided_slice %166 {offsets = [0, 0], sizes = [8, 128], strides = [1, 1]} : vector<8x256xf32> to vector<8x128xf32>
    %168 = arith.mulf %137, %167 : vector<8x128xf32>
    %169 = vector.extract_strided_slice %166 {offsets = [0, 128], sizes = [8, 128], strides = [1, 1]} : vector<8x256xf32> to vector<8x128xf32>
    %170 = arith.addf %168, %169 : vector<8x128xf32>
    %171 = arith.truncf %170 : vector<8x128xf32> to vector<8x128xbf16>
    %c2272 = arith.constant 2272 : index
    %c0_87 = arith.constant 0 : index
    %172 = vector.load %arg2[%c2272, %c0_87] : memref<2304x128xbf16, #tpu.memory_space<vmem>>, vector<4x8xbf16>
    %cst_88 = arith.constant dense<0.000000e+00> : vector<4x128xf32>
    %173 = tpu.matmul %172, %171, %cst_88 {dimension_numbers = #tpu.dot_dimension_numbers<[1], [0], [0], [1], [0, 0, 1, 1], [], []>} : vector<4x8xbf16>, vector<8x128xbf16>, vector<4x128xf32> -> vector<4x128xf32>
    %174 = arith.truncf %173 : vector<4x128xf32> to vector<4x128xbf16>
    %c2280 = arith.constant 2280 : index
    %c0_89 = arith.constant 0 : index
    %175 = vector.load %arg2[%c2280, %c0_89] : memref<2304x128xbf16, #tpu.memory_space<vmem>>, vector<4x8xbf16>
    %cst_90 = arith.constant dense<0.000000e+00> : vector<4x128xf32>
    %176 = tpu.matmul %175, %171, %cst_90 {dimension_numbers = #tpu.dot_dimension_numbers<[1], [0], [0], [1], [0, 0, 1, 1], [], []>} : vector<4x8xbf16>, vector<8x128xbf16>, vector<4x128xf32> -> vector<4x128xf32>
    %177 = arith.truncf %176 : vector<4x128xf32> to vector<4x128xbf16>
    %c2288 = arith.constant 2288 : index
    %c0_91 = arith.constant 0 : index
    %178 = vector.load %arg2[%c2288, %c0_91] : memref<2304x128xbf16, #tpu.memory_space<vmem>>, vector<4x8xbf16>
    %cst_92 = arith.constant dense<0.000000e+00> : vector<4x128xf32>
    %179 = tpu.matmul %178, %171, %cst_92 {dimension_numbers = #tpu.dot_dimension_numbers<[1], [0], [0], [1], [0, 0, 1, 1], [], []>} : vector<4x8xbf16>, vector<8x128xbf16>, vector<4x128xf32> -> vector<4x128xf32>
    %180 = arith.truncf %179 : vector<4x128xf32> to vector<4x128xbf16>
    %c2296 = arith.constant 2296 : index
    %c0_93 = arith.constant 0 : index
    %181 = vector.load %arg2[%c2296, %c0_93] : memref<2304x128xbf16, #tpu.memory_space<vmem>>, vector<4x8xbf16>
    %cst_94 = arith.constant dense<0.000000e+00> : vector<4x128xf32>
    %182 = tpu.matmul %181, %171, %cst_94 {dimension_numbers = #tpu.dot_dimension_numbers<[1], [0], [0], [1], [0, 0, 1, 1], [], []>} : vector<4x8xbf16>, vector<8x128xbf16>, vector<4x128xf32> -> vector<4x128xf32>
    %183 = arith.truncf %182 : vector<4x128xf32> to vector<4x128xbf16>
    %184 = tpu.concatenate %174, %177, %180, %183 in 1 : vector<4x128xbf16>, vector<4x128xbf16>, vector<4x128xbf16>, vector<4x128xbf16> -> vector<4x512xbf16>
    %c1760 = arith.constant 1760 : index
    %c0_95 = arith.constant 0 : index
    %185 = vector.load %arg2[%c1760, %c0_95] : memref<2304x128xbf16, #tpu.memory_space<vmem>>, vector<512x128xbf16>
    %cst_96 = arith.constant dense<0.000000e+00> : vector<4x128xf32>
    %186 = tpu.matmul %184, %185, %cst_96 {dimension_numbers = #tpu.dot_dimension_numbers<[1], [0], [0], [1], [0, 0, 1, 1], [], []>} : vector<4x512xbf16>, vector<512x128xbf16>, vector<4x128xf32> -> vector<4x128xf32>
    %c544_97 = arith.constant 544 : index
    %c0_98 = arith.constant 0 : index
    %187 = vector.load %arg3[%c544_97, %c0_98] : memref<784x128xf32, #tpu.memory_space<vmem>>, vector<1x128xf32>
    %188 = vector.broadcast %187 : vector<1x128xf32> to vector<4x128xf32>
    %189 = arith.addf %186, %188 : vector<4x128xf32>
    %cst_99 = arith.constant 0.000000e+00 : f32
    %190 = vector.broadcast %cst_99 : f32 to vector<4x128xf32>
    %191 = arith.cmpf oge, %189, %190 : vector<4x128xf32>
    %cst_100 = arith.constant 2.000000e-01 : f32
    %192 = vector.broadcast %cst_100 : f32 to vector<4x128xf32>
    %193 = arith.mulf %192, %189 : vector<4x128xf32>
    %194 = arith.select %191, %189, %193 : vector<4x128xi1>, vector<4x128xf32>
    %195 = arith.mulf %194, %194 : vector<4x128xf32>
    %196 = tpu.concatenate %194, %195 in 1 : vector<4x128xf32>, vector<4x128xf32> -> vector<4x256xf32>
    %c552 = arith.constant 552 : index
    %c0_101 = arith.constant 0 : index
    %197 = vector.load %arg3[%c552, %c0_101] : memref<784x128xf32, #tpu.memory_space<vmem>>, vector<2x4xf32>
    %cst_102 = arith.constant dense<0.000000e+00> : vector<2x256xf32>
    %198 = tpu.matmul %197, %196, %cst_102 {dimension_numbers = #tpu.dot_dimension_numbers<[1], [0], [0], [1], [0, 0, 1, 1], [], []>} : vector<2x4xf32>, vector<4x256xf32>, vector<2x256xf32> -> vector<2x256xf32>
    %c568 = arith.constant 568 : index
    %c0_103 = arith.constant 0 : index
    %199 = vector.load %arg3[%c568, %c0_103] : memref<784x128xf32, #tpu.memory_space<vmem>>, vector<128x64xf32>
    %200 = vector.extract_strided_slice %198 {offsets = [0, 0], sizes = [2, 128], strides = [1, 1]} : vector<2x256xf32> to vector<2x128xf32>
    %cst_104 = arith.constant dense<0.000000e+00> : vector<2x64xf32>
    %201 = tpu.matmul %200, %199, %cst_104 {dimension_numbers = #tpu.dot_dimension_numbers<[1], [0], [0], [1], [0, 0, 1, 1], [], []>} : vector<2x128xf32>, vector<128x64xf32>, vector<2x64xf32> -> vector<2x64xf32>
    %cst_105 = arith.constant 2.500000e-01 : f32
    %202 = vector.broadcast %cst_105 : f32 to vector<2x64xf32>
    %203 = arith.mulf %201, %202 : vector<2x64xf32>
    %204 = vector.extract_strided_slice %198 {offsets = [0, 128], sizes = [2, 128], strides = [1, 1]} : vector<2x256xf32> to vector<2x128xf32>
    %cst_106 = arith.constant dense<0.000000e+00> : vector<2x64xf32>
    %205 = tpu.matmul %204, %199, %cst_106 {dimension_numbers = #tpu.dot_dimension_numbers<[1], [0], [0], [1], [0, 0, 1, 1], [], []>} : vector<2x128xf32>, vector<128x64xf32>, vector<2x64xf32> -> vector<2x64xf32>
    %cst_107 = arith.constant 2.500000e-01 : f32
    %206 = vector.broadcast %cst_107 : f32 to vector<2x64xf32>
    %207 = arith.mulf %205, %206 : vector<2x64xf32>
    %208 = arith.mulf %203, %203 : vector<2x64xf32>
    %209 = arith.subf %207, %208 : vector<2x64xf32>
    %cst_108 = arith.constant 0.000000e+00 : f32
    %210 = vector.broadcast %cst_108 : f32 to vector<2x64xf32>
    %211 = arith.maximumf %209, %210 : vector<2x64xf32>
    %cst_109 = arith.constant 9.99999974E-6 : f32
    %212 = vector.broadcast %cst_109 : f32 to vector<2x64xf32>
    %213 = arith.addf %211, %212 : vector<2x64xf32>
    %214 = math.rsqrt %213 : vector<2x64xf32>
    %c696 = arith.constant 696 : index
    %c0_110 = arith.constant 0 : index
    %215 = vector.load %arg3[%c696, %c0_110] : memref<784x128xf32, #tpu.memory_space<vmem>>, vector<64x128xf32>
    %cst_111 = arith.constant dense<0.000000e+00> : vector<2x128xf32>
    %216 = tpu.matmul %214, %215, %cst_111 {dimension_numbers = #tpu.dot_dimension_numbers<[1], [0], [0], [1], [0, 0, 1, 1], [], []>} : vector<2x64xf32>, vector<64x128xf32>, vector<2x128xf32> -> vector<2x128xf32>
    %cst_112 = arith.constant 0.000000e+00 : f32
    %217 = vector.broadcast %cst_112 : f32 to vector<2x64xf32>
    %218 = arith.subf %217, %203 : vector<2x64xf32>
    %219 = arith.mulf %218, %214 : vector<2x64xf32>
    %cst_113 = arith.constant dense<0.000000e+00> : vector<2x128xf32>
    %220 = tpu.matmul %219, %215, %cst_113 {dimension_numbers = #tpu.dot_dimension_numbers<[1], [0], [0], [1], [0, 0, 1, 1], [], []>} : vector<2x64xf32>, vector<64x128xf32>, vector<2x128xf32> -> vector<2x128xf32>
    %221 = tpu.concatenate %216, %220 in 1 : vector<2x128xf32>, vector<2x128xf32> -> vector<2x256xf32>
    %c560 = arith.constant 560 : index
    %c0_114 = arith.constant 0 : index
    %222 = vector.load %arg3[%c560, %c0_114] : memref<784x128xf32, #tpu.memory_space<vmem>>, vector<4x2xf32>
    %cst_115 = arith.constant dense<0.000000e+00> : vector<4x256xf32>
    %223 = tpu.matmul %222, %221, %cst_115 {dimension_numbers = #tpu.dot_dimension_numbers<[1], [0], [0], [1], [0, 0, 1, 1], [], []>} : vector<4x2xf32>, vector<2x256xf32>, vector<4x256xf32> -> vector<4x256xf32>
    %224 = vector.extract_strided_slice %223 {offsets = [0, 0], sizes = [4, 128], strides = [1, 1]} : vector<4x256xf32> to vector<4x128xf32>
    %225 = arith.mulf %194, %224 : vector<4x128xf32>
    %226 = vector.extract_strided_slice %223 {offsets = [0, 128], sizes = [4, 128], strides = [1, 1]} : vector<4x256xf32> to vector<4x128xf32>
    %227 = arith.addf %225, %226 : vector<4x128xf32>
    %c760 = arith.constant 760 : index
    %c0_116 = arith.constant 0 : index
    %228 = vector.load %arg3[%c760, %c0_116] : memref<784x128xf32, #tpu.memory_space<vmem>>, vector<4x128xf32>
    %229 = arith.mulf %227, %228 : vector<4x128xf32>
    %c768 = arith.constant 768 : index
    %c0_117 = arith.constant 0 : index
    %230 = vector.load %arg3[%c768, %c0_117] : memref<784x128xf32, #tpu.memory_space<vmem>>, vector<2x4xf32>
    %cst_118 = arith.constant dense<0.000000e+00> : vector<2x128xf32>
    %231 = tpu.matmul %230, %229, %cst_118 {dimension_numbers = #tpu.dot_dimension_numbers<[1], [0], [0], [1], [0, 0, 1, 1], [], []>} : vector<2x4xf32>, vector<4x128xf32>, vector<2x128xf32> -> vector<2x128xf32>
    %cst_119 = arith.constant dense<0.000000e+00> : vector<2xf32>
    %232 = vector.multi_reduction <add>, %231, %cst_119 [1] : vector<2x128xf32> to vector<2xf32>
    %233 = vector.shape_cast %232 : vector<2xf32> to vector<2x1xf32>
    %c776 = arith.constant 776 : index
    %c0_120 = arith.constant 0 : index
    %234 = vector.load %arg3[%c776, %c0_120] : memref<784x128xf32, #tpu.memory_space<vmem>>, vector<1x1xf32>
    %235 = vector.broadcast %234 : vector<1x1xf32> to vector<2x1xf32>
    %236 = arith.addf %233, %235 : vector<2x1xf32>
    %237 = arith.negf %236 : vector<2x1xf32>
    %238 = math.exp %237 : vector<2x1xf32>
    %cst_121 = arith.constant 1.000000e+00 : f32
    %239 = vector.broadcast %cst_121 : f32 to vector<2x1xf32>
    %240 = arith.addf %239, %238 : vector<2x1xf32>
    %241 = arith.divf %239, %240 : vector<2x1xf32>
    %c0_122 = arith.constant 0 : index
    %c0_123 = arith.constant 0 : index
    %242 = vector.load %arg4[%c0_122, %c0_123] : memref<2x1xf32, #tpu.memory_space<vmem>>, vector<2x1xf32>
    tpu.vector_store %arg4[%c0_122, %c0_123], %241 {strides = array<i32>} : memref<2x1xf32, #tpu.memory_space<vmem>>, vector<2x1xf32>,
    return
  }
  func.func @transform_0(%arg0: i32) -> (i32, i32) {
    %c0_i32 = arith.constant 0 : i32
    %c0_i32_0 = arith.constant 0 : i32
    %c0_i32_1 = arith.constant 0 : i32
    return %c0_i32, %c0_i32_0 : i32, i32
  }
  func.func @transform_1(%arg0: i32) -> (i32, i32) {
    %c0_i32 = arith.constant 0 : i32
    %c0_i32_0 = arith.constant 0 : i32
    %c0_i32_1 = arith.constant 0 : i32
    return %c0_i32, %c0_i32_0 : i32, i32
  }
  func.func @transform_2(%arg0: i32) -> (i32, i32) {
    %c0_i32 = arith.constant 0 : i32
    %c0_i32_0 = arith.constant 0 : i32
    %c0_i32_1 = arith.constant 0 : i32
    return %c0_i32, %c0_i32_0 : i32, i32
  }
  func.func @transform_3(%arg0: i32) -> (i32, i32) {
    %c0_i32 = arith.constant 0 : i32
    %c0_i32_0 = arith.constant 0 : i32
    %c0_i32_1 = arith.constant 0 : i32
    return %c0_i32, %c0_i32_0 : i32, i32
  }
}

</mosaic_0001>

<bundles_post_ra>
// kernel: fwd.1
= control target key start
LH: loop header
LB: loop body
LE: loop exit
PB: predicated region body
PF: predicated region fallthrough
CT: control target
= control target key end

     0   :  { %8 = vsyncpa [#allocation3], 0  ;;  %s6304_s0 = inlined_call_operand.vmem [shape: bf16[64,128], index: 0, kind: input, shape index: {}]   ;;  %s6305_s1 = inlined_call_operand.hbm [shape: bf16[2304,128], index: 1, kind: input, shape index: {}]   ;;  %s6306_s2 = inlined_call_operand.hbm [shape: f32[784,128], index: 2, kind: input, shape index: {}]   ;;  %s6307_s3 = inlined_call_operand.vmem [shape: f32[2,1], index: 3, kind: output, shape index: {}]  }
   0x1   :  { %9 = vsyncpa [#allocation5], 0  ;;  %s5728_s12 = smov [#allocation2]  }
   0x2   :  { %s17_s13 = sshll.u32 %s5728_s12, 4  ;;  %s18_s13 = int_to_ptr.vmem [resolvable:$true] %s17_s13 }
   0x3   :  { %s5692_s14 = scalar_lea.vmem %s18_s13, 18432  ;;  %p5697_p1 = scmp.lt.s32.totalorder %s18_s13, %s18_s13 }
   0x4   :  { %p5693_p0 = scmp.ne.s32.totalorder %s18_s13, %s5692_s14  ;;  %p5698_p2 = scmp.lt.s32.totalorder %s5692_s14, %s5692_s14 }
   0x6   :  { %p5699_p3 = por %p5698_p2, %p5697_p1 }
   0x8   :  { %p5700_p4 = pnand %p5699_p3, %p5693_p0 }
   0xa   :  { %5703 = shalt.err (!%p5700_p4)
}
   0xb   :  { %s5729_s15 = smov 64   ;;  %s5730_s16 = smov 4  }
   0xc   :  { %23 = dma.hbm_to_vmem [thread:$0]  %s6305_s1, 18432, %s18_s13, [#allocation3], %s5729_s15, %s5729_s15, %s5730_s16  }
   0xd   :  { %s5731_s19 = smov [#allocation4]  }
   0xe   :  { %s29_s20 = sshll.u32 %s5731_s19, 4  ;;  %s30_s20 = int_to_ptr.vmem [resolvable:$true] %s29_s20 }
   0xf   :  { %s5712_s21 = scalar_lea.vmem %s30_s20, 12544  ;;  %p5717_p6 = scmp.lt.s32.totalorder %s30_s20, %s30_s20 }
  0x10   :  { %p5713_p5 = scmp.ne.s32.totalorder %s30_s20, %s5712_s21  ;;  %p5718_p7 = scmp.lt.s32.totalorder %s5712_s21, %s5712_s21 }
  0x12   :  { %p5719_p8 = por %p5718_p7, %p5717_p6 }
  0x14   :  { %p5720_p9 = pnand %p5719_p8, %p5713_p5 }
  0x16   :  { %5723 = shalt.err (!%p5720_p9)
}
  0x17   :  { %s5732_s22 = smov 128   ;;  %s5733_s23 = smov 8  }
  0x18   :  { %35 = dma.hbm_to_vmem [thread:$0]  %s6306_s2, 12544, %s30_s20, [#allocation5], %s5732_s22, %s5732_s22, %s5733_s23  }
  0x19   :  { %5724 = dma.done.wait [#allocation3], 18432  }
  0x1a   :  { %5725 = vsyncadd [#allocation3], 4294948864 }
  0x1b   :  { %5726 = dma.done.wait [#allocation5], 12544  }
  0x1c   :  { %5727 = vsyncadd [#allocation5], 4294954752  ;;  %v5528_v0 = vld [vmem:[%s6304_s0 + $0x18] sm:$0xff]   ;;  %v5529_v1 = vld [vmem:[%s6304_s0 + $0x10] sm:$0xff]   ;;  %vm89_vm0 = vcmask 523264   ;;  %vm736_vm5 = vcmask 261120  }
  0x1d   :  { %5023 = vmatprep.subr.bf16.mxu0 %v5528_v0  ;;  %5035 = vmatprep.subr.bf16.mxu1 %v5528_v0  ;;  %v5530_v2 = vld [vmem:[%s6304_s0 + $0x8] sm:$0xff]   ;;  %v5532_v3 = vld [vmem:[#allocation2 + $0x100] sm:$0xff]   ;;  %v5533_v4 = vld [vmem:[#allocation2 + $0x110] sm:$0xff]   ;;  %vm5735_vm6 = vmmov 0   ;;  %vm975_vm7 = vcmask 64512   ;;  %vm1141_vm8 = vcmask 1041408  }
  0x1e   :  { %5024 = vmatpush3.bf16.msra.mxu0 %v5528_v0  ;;  %5036 = vmatpush3.bf16.msra.mxu1 %v5528_v0  ;;  %v5531_v5 = vld [vmem:[%s6304_s0] sm:$0xff]   ;;  %v5534_v6 = vld [vmem:[#allocation2 + $0x108] sm:$0xff]   ;;  %v5535_v7 = vld [vmem:[#allocation2 + $0x118] sm:$0xff]   ;;  %vm1128_vm9 = vcmask 15360   ;;  %vm1807_vm12 = vcmask 130048   ;;  %vm3294_vm14 = vcmask 1043456  }
  0x1f   :  { %5025 = vmatprep.subr.bf16.mxu0 %v5529_v1  ;;  %5037 = vmatprep.subr.bf16.mxu1 %v5529_v1  ;;  %v5536_v8 = vld [vmem:[#allocation2 + $0x120] sm:$0xff]   ;;  %v5537_v9 = vld [vmem:[#allocation2 + $0x130] sm:$0xff]   ;;  %v5540_v10 = vld [vmem:[#allocation2 + $0x78] sm:$0xff]  }
  0x20   :  { %5031 = vmatprep.mubr.msk.bf16.mxu0 %vm89_vm0, %v5532_v3  ;;  %5043 = vmatprep.mubr.msk.bf16.mxu1 %vm89_vm0, %v5533_v4  ;;  %v5549_v11 = vld [vmem:[#allocation2 + $0xf8] sm:$0xff]   ;;  %v5538_v12 = vld [vmem:[#allocation2 + $0x128] sm:$0xff]   ;;  %v5542_v16 = vld [vmem:[#allocation2 + $0x70] sm:$0xff]   ;;  %v5734_v4 = vmov 0.0  }
  0x21   :  { %v5539_v13 = vld [vmem:[#allocation2 + $0x138] sm:$0xff]   ;;  %v5553_v17 = vld [vmem:[#allocation2 + $0xf0] sm:$0xff]   ;;  %v5544_v20 = vld [vmem:[#allocation2 + $0x68] sm:$0xff]  }
  0x22   :  { %5026 = vmatpush3.bf16.msra.mxu0 %v5529_v1  ;;  %5038 = vmatpush3.bf16.msra.mxu1 %v5529_v1  ;;  %v5541_v14 = vld [vmem:[#allocation2 + $0x38] sm:$0xff]   ;;  %v5543_v18 = vld [vmem:[#allocation2 + $0x30] sm:$0xff]   ;;  %v5545_v21 = vld [vmem:[#allocation2 + $0x28] sm:$0xff]  }
  0x23   :  { %5027 = vmatprep.subr.bf16.mxu0 %v5530_v2  ;;  %5039 = vmatprep.subr.bf16.mxu1 %v5530_v2  ;;  %v5551_v15 = vld [vmem:[#allocation2 + $0xb8] sm:$0xff]   ;;  %v5555_v19 = vld [vmem:[#allocation2 + $0xb0] sm:$0xff]   ;;  %v5546_v22 = vld [vmem:[#allocation2 + $0x60] sm:$0xff]  }
  0x24   :  { %v5547_v23 = vld [vmem:[#allocation2 + $0x20] sm:$0xff]   ;;  %v5548_v24 = vld [vmem:[#allocation2 + $0x58] sm:$0xff]   ;;  %v5552_v26 = vld [vmem:[#allocation2 + $0x50] sm:$0xff]  }
  0x25   :  { %v5550_v25 = vld [vmem:[#allocation2 + $0x18] sm:$0xff]   ;;  %v5554_v27 = vld [vmem:[#allocation2 + $0x10] sm:$0xff]   ;;  %v5556_v28 = vld [vmem:[#allocation2 + $0x48] sm:$0xff]  }
  0x26   :  { %5028 = vmatpush3.bf16.msra.mxu0 %v5530_v2  ;;  %5040 = vmatpush3.bf16.msra.mxu1 %v5530_v2  ;;  %v5557_v29 = vld [vmem:[#allocation2 + $0xe8] sm:$0xff]   ;;  %v5560_v32 = vld [vmem:[#allocation2 + $0x40] sm:$0xff]   ;;  %v5564_v36 = vld [vmem:[#allocation2 + $0xd8] sm:$0xff]  }
  0x27   :  { %5029 = vmatprep.subr.bf16.mxu0 %v5531_v5  ;;  %5041 = vmatprep.subr.bf16.mxu1 %v5531_v5  ;;  %v5558_v30 = vld [vmem:[#allocation2 + $0x8] sm:$0xff]   ;;  %v5561_v33 = vld [vmem:[#allocation2 + $0xe0] sm:$0xff]   ;;  %v5565_v37 = vld [vmem:[#allocation2 + $0x98] sm:$0xff]  }
  0x28   :  { %v5559_v31 = vld [vmem:[#allocation2 + $0xa8] sm:$0xff]   ;;  %v5562_v34 = vld [vmem:[#allocation2] sm:$0xff]   ;;  %v5566_v38 = vld [vmem:[#allocation2 + $0xd0] sm:$0xff]  }
  0x29   :  { %v5563_v35 = vld [vmem:[#allocation2 + $0xa0] sm:$0xff]   ;;  %v5567_v39 = vld [vmem:[#allocation2 + $0x90] sm:$0xff]   ;;  %v5568_v40 = vld [vmem:[#allocation2 + $0xc8] sm:$0xff]  }
  0x2a   :  { %5030 = vmatpush3.bf16.msra.mxu0 %v5531_v5  ;;  %5042 = vmatpush3.bf16.msra.mxu1 %v5531_v5  ;;  %v5569_v41 = vld [vmem:[#allocation2 + $0x88] sm:$0xff]   ;;  %v5570_v42 = vld [vmem:[#allocation2 + $0xc0] sm:$0xff]  }
  0x2b   :  { %5047 = vmatprep.subr.bf16.mxu0 %v5528_v0  ;;  %5059 = vmatprep.subr.bf16.mxu1 %v5528_v0  ;;  %v5571_v43 = vld [vmem:[#allocation2 + $0x80] sm:$0xff]  }
  0x2d   :  { %5032 = vmatmul.mubr.msk.bf16.vlgmr.msra.gmra.mxu0 %vm89_vm0, %v5534_v6  ;;  %5044 = vmatmul.mubr.msk.bf16.vlgmr.msra.gmra.mxu1 %vm89_vm0, %v5535_v7  ;;  %v5786_v6 = vld [vmem:[#allocation4 + $0xa0] sm:$0xff]  ;;  %v5790_v7 = vld [vmem:[#allocation4 + $0x98] sm:$0xff] }
  0x2e   :  { %5048 = vmatpush3.bf16.msra.mxu0 %v5528_v0  ;;  %5060 = vmatpush3.bf16.msra.mxu1 %v5528_v0 }
  0x2f   :  { %5049 = vmatprep.subr.bf16.mxu0 %v5529_v1  ;;  %5061 = vmatprep.subr.bf16.mxu1 %v5529_v1 }
  0x30   :  { %5055 = vmatprep.mubr.msk.bf16.mxu0 %vm89_vm0, %v5536_v8  ;;  %5067 = vmatprep.mubr.msk.bf16.mxu1 %vm89_vm0, %v5537_v9  ;;  %v5794_v8 = vld [vmem:[#allocation4 + $0x90] sm:$0xff]  ;;  %v5798_v9 = vld [vmem:[#allocation4 + $0x88] sm:$0xff] }
  0x32   :  { %5050 = vmatpush3.bf16.msra.mxu0 %v5529_v1  ;;  %5062 = vmatpush3.bf16.msra.mxu1 %v5529_v1 }
  0x33   :  { %5051 = vmatprep.subr.bf16.mxu0 %v5530_v2  ;;  %5063 = vmatprep.subr.bf16.mxu1 %v5530_v2 }
  0x36   :  { %5052 = vmatpush3.bf16.msra.mxu0 %v5530_v2  ;;  %5064 = vmatpush3.bf16.msra.mxu1 %v5530_v2 }
  0x37   :  { %5053 = vmatprep.subr.bf16.mxu0 %v5531_v5  ;;  %5065 = vmatprep.subr.bf16.mxu1 %v5531_v5 }
  0x3a   :  { %5054 = vmatpush3.bf16.msra.mxu0 %v5531_v5  ;;  %5066 = vmatpush3.bf16.msra.mxu1 %v5531_v5  ;;  %v5784_v5 = vld [vmem:[#allocation4 + $0xa8] sm:$0xff] }
  0x3b   :  { %4631 = vmatprep.subr.bf16.mxu0 %v5540_v10  ;;  %4659 = vmatprep.subr.bf16.mxu1 %v5549_v11  ;;  %v5802_v10 = vld [vmem:[#allocation4 + $0x80] sm:$0xff]  ;;  %v5806_v11 = vld [vmem:[#allocation4 + $0x78] sm:$0xff] }
  0x3d   :  { %5056 = vmatmul.mubr.msk.bf16.vlgmr.msra.gmra.mxu0 %vm89_vm0, %v5538_v12  ;;  %5068 = vmatmul.mubr.msk.bf16.vlgmr.msra.gmra.mxu1 %vm89_vm0, %v5539_v13  ;;  %v5810_v12 = vld [vmem:[#allocation4 + $0x70] sm:$0xff]  ;;  %v5814_v13 = vld [vmem:[#allocation4 + $0x68] sm:$0xff] }
  0x3e   :  { %4632 = vmatpush3.bf16.msra.mxu0 %v5541_v14  ;;  %4660 = vmatpush3.bf16.msra.mxu1 %v5551_v15  ;;  %v5818_v14 = vld [vmem:[#allocation4 + $0x60] sm:$0xff]  ;;  %v5822_v15 = vld [vmem:[#allocation4 + $0x58] sm:$0xff] }
  0x3f   :  { %4633 = vmatprep.subr.bf16.mxu0 %v5542_v16  ;;  %4661 = vmatprep.subr.bf16.mxu1 %v5553_v17  ;;  %v5826_v16 = vld [vmem:[#allocation4 + $0x50] sm:$0xff]  ;;  %v5830_v17 = vld [vmem:[#allocation4 + $0x48] sm:$0xff] }
  0x42   :  { %4634 = vmatpush3.bf16.msra.mxu0 %v5543_v18  ;;  %4662 = vmatpush3.bf16.msra.mxu1 %v5555_v19  ;;  %v5834_v18 = vld [vmem:[#allocation4 + $0x40] sm:$0xff]  ;;  %v5838_v19 = vld [vmem:[#allocation4 + $0x38] sm:$0xff] }
  0x43   :  { %4635 = vmatprep.subr.bf16.mxu0 %v5544_v20  ;;  %4663 = vmatprep.subr.bf16.mxu1 %v5557_v29 }
  0x46   :  { %4636 = vmatpush3.bf16.msra.mxu0 %v5545_v21  ;;  %4664 = vmatpush3.bf16.msra.mxu1 %v5559_v31 }
  0x47   :  { %4637 = vmatprep.subr.bf16.mxu0 %v5546_v22  ;;  %4665 = vmatprep.subr.bf16.mxu1 %v5561_v33 }
  0x4a   :  { %4638 = vmatpush3.bf16.msra.mxu0 %v5547_v23  ;;  %4666 = vmatpush3.bf16.msra.mxu1 %v5563_v35  ;;  %v4425_v35 = vld [vmem:[#allocation4] ss:$0 sm:$0xff] }
  0x4b   :  { %4639 = vmatprep.subr.bf16.mxu0 %v5548_v24  ;;  %4667 = vmatprep.subr.bf16.mxu1 %v5564_v36 }
  0x4e   :  { %4640 = vmatpush3.bf16.msra.mxu0 %v5550_v25  ;;  %4668 = vmatpush3.bf16.msra.mxu1 %v5565_v37 }
  0x4f   :  { %4641 = vmatprep.subr.bf16.mxu0 %v5552_v26  ;;  %4669 = vmatprep.subr.bf16.mxu1 %v5566_v38 }
  0x52   :  { %4642 = vmatpush3.bf16.msra.mxu0 %v5554_v27  ;;  %4670 = vmatpush3.bf16.msra.mxu1 %v5567_v39 }
  0x53   :  { %4643 = vmatprep.subr.bf16.mxu0 %v5556_v28  ;;  %4671 = vmatprep.subr.bf16.mxu1 %v5568_v40 }
  0x56   :  { %4644 = vmatpush3.bf16.msra.mxu0 %v5558_v30  ;;  %4672 = vmatpush3.bf16.msra.mxu1 %v5569_v41 }
  0x57   :  { %4645 = vmatprep.subr.bf16.mxu0 %v5560_v32  ;;  %4673 = vmatprep.subr.bf16.mxu1 %v5570_v42 }
  0x5a   :  { %4646 = vmatpush3.bf16.msra.mxu0 %v5562_v34  ;;  %4674 = vmatpush3.bf16.msra.mxu1 %v5571_v43 }
  0x5b   :  { %5071 = vmatprep.subr.mxu1 %v5734_v4 }
  0xed   :  { %v5033_v44 = vpop.f32.mrf.mxu0  ;;  %v5045_v45 = vpop.f32.mrf.mxu1 }
  0xef   :  { %v130_v46 = vpop.f32.mrf.mxu0  ;;  %v201_v47 = vpop.f32.mrf.mxu1 }
  0xf1   :  { %v5034_v48 = vpop.f32.mrf.mxu0  ;;  %v5046_v49 = vpop.f32.mrf.mxu1 }
  0xf2   :  { %v217_v54 = vpack.c.bf16 %v5046_v49, %v5045_v45  ;;  %v146_v55 = vpack.c.bf16 %v5034_v48, %v5033_v44 }
  0xf3   :  { %v133_v50 = vpop.f32.mrf.mxu0  ;;  %v204_v51 = vpop.f32.mrf.mxu1 }
  0xf4   :  { %v145_v52 = vpack.c.bf16 %v133_v50, %v130_v46  ;;  %v216_v53 = vpack.c.bf16 %v204_v51, %v201_v47 }
  0xf6   :  { %653 = vmatprep.mubr.bf16.mxu0 %v216_v53 }
  0xf7   :  { %654 = vmatmul.mubr.bf16.vlgmr.msra.gmra.mxu0 %v145_v52 }
  0xf8   :  { %661 = vmatprep.mubr.bf16.mxu0 %v217_v54 }
  0xfd   :  { %v5057_v56 = vpop.f32.mrf.mxu0  ;;  %v5069_v57 = vpop.f32.mrf.mxu1 }
  0xff   :  { %v272_v58 = vpop.f32.mrf.mxu0  ;;  %v343_v59 = vpop.f32.mrf.mxu1  ;;  %662 = vmatmul.mubr.bf16.gmra.mxu0 %v146_v55 }
 0x100   :  { %804 = vmatprep.mubr.f32.mxu0 %v5734_v4 }
 0x101   :  { %v5058_v60 = vpop.f32.mrf.mxu0  ;;  %v5070_v61 = vpop.f32.mrf.mxu1 }
 0x102   :  { %v359_v2 = vpack.c.bf16 %v5070_v61, %v5069_v57  ;;  %v288_v3 = vpack.c.bf16 %v5058_v60, %v5057_v56 }
 0x103   :  { %v275_v62 = vpop.f32.mrf.mxu0  ;;  %v346_v63 = vpop.f32.mrf.mxu1 }
 0x104   :  { %v287_v0 = vpack.c.bf16 %v275_v62, %v272_v58  ;;  %v358_v1 = vpack.c.bf16 %v346_v63, %v343_v59 }
 0x106   :  { %702 = vmatprep.mubr.bf16.mxu1 %v358_v1  ;;  %v735_v1 = vld [vmem:[#allocation4 + $0x8] sm:$0x3] }
 0x107   :  { %703 = vmatmul.mubr.bf16.vlgmr.msra.gmra.mxu1 %v287_v0 }
 0x108   :  { %710 = vmatprep.mubr.bf16.mxu1 %v359_v2  ;;  %5072 = vmatpush3.msra.mxu1 %v5784_v5  ;;  %v811_v2 = vld [vmem:[#allocation4 + $0x30] sm:$0xff] }
 0x109   :  { %5073 = vmatprep.subr.mxu1 %v5734_v4 }
 0x10a   :  { %5074 = vmatpush3.msra.mxu1 %v5786_v6 }
 0x10b   :  { %5075 = vmatprep.subr.mxu1 %v5734_v4 }
 0x10c   :  { %5076 = vmatpush3.msra.mxu1 %v5790_v7 }
 0x10d   :  { %5077 = vmatprep.subr.mxu1 %v5734_v4 }
 0x10e   :  { %5078 = vmatpush3.msra.mxu1 %v5794_v8 }
 0x10f   :  { %711 = vmatmul.mubr.bf16.gmra.mxu1 %v288_v3  ;;  %5079 = vmatprep.subr.mxu1 %v5734_v4 }
 0x110   :  { %5080 = vmatpush3.msra.mxu1 %v5798_v9  ;;  %5103 = vmatprep.mubr.msk.f32.mxu1 %vm5735_vm6, %v5734_v4 }
 0x111   :  { %5081 = vmatprep.subr.mxu1 %v5734_v4 }
 0x112   :  { %5082 = vmatpush3.msra.mxu1 %v5802_v10 }
 0x113   :  { %5083 = vmatprep.subr.mxu1 %v5734_v4 }
 0x114   :  { %5084 = vmatpush3.msra.mxu1 %v5806_v11 }
 0x115   :  { %5085 = vmatprep.subr.mxu1 %v5734_v4 }
 0x116   :  { %5086 = vmatpush3.msra.mxu1 %v5810_v12 }
 0x117   :  { %5087 = vmatprep.subr.mxu1 %v5734_v4 }
 0x118   :  { %5088 = vmatpush3.msra.mxu1 %v5814_v13 }
 0x119   :  { %5089 = vmatprep.subr.mxu1 %v5734_v4 }
 0x11a   :  { %5090 = vmatpush3.msra.mxu1 %v5818_v14 }
 0x11b   :  { %5091 = vmatprep.subr.mxu1 %v5734_v4 }
 0x11c   :  { %5092 = vmatpush3.msra.mxu1 %v5822_v15 }
 0x11d   :  { %5093 = vmatprep.subr.mxu1 %v5734_v4 }
 0x11e   :  { %5094 = vmatpush3.msra.mxu1 %v5826_v16 }
 0x11f   :  { %5095 = vmatprep.subr.mxu1 %v5734_v4 }
 0x120   :  { %5096 = vmatpush3.msra.mxu1 %v5830_v17 }
 0x121   :  { %5097 = vmatprep.subr.mxu1 %v5734_v4 }
 0x122   :  { %5098 = vmatpush3.msra.mxu1 %v5834_v18 }
 0x123   :  { %5099 = vmatprep.subr.mxu1 %v5734_v4 }
 0x124   :  { %5100 = vmatpush3.msra.mxu1 %v5838_v19 }
 0x125   :  { %5101 = vmatprep.subr.mxu1 %v5734_v4 }
 0x126   :  { %5102 = vmatpush3.msra.mxu1 %v811_v2 }
 0x127   :  { %5141 = vmatprep.subr.mxu1 %v5734_v4 }
 0x1b7   :  { %v4647_v20 = vpop.f32.mrf.mxu0 }
 0x1b9   :  { %v4648_v21 = vpop.f32.mrf.mxu0 }
 0x1ba   :  { %v4649_v36 = vadd.f32 %v4648_v21, %v4647_v20 }
 0x1bb   :  { %v4650_v22 = vpop.f32.mrf.mxu0 }
 0x1bc   :  { %v656_v47 = vadd.f32 %v4649_v36, %v4425_v35 }
 0x1bd   :  { %v4651_v23 = vpop.f32.mrf.mxu0 }
 0x1be   :  { %v4652_v34 = vadd.f32 %v4651_v23, %v4650_v22  ;;  %v1124_v23 = vld [vmem:[#allocation4 + $0x10] sm:$0xff] }
 0x1bf   :  { %v4653_v24 = vpop.f32.mrf.mxu0 }
 0x1c0   :  { %v659_v43 = vadd.f32 %v4652_v34, %v4425_v35 }
 0x1c1   :  { %v4654_v25 = vpop.f32.mrf.mxu0 }
 0x1c2   :  { %v4655_v31 = vadd.f32 %v4654_v25, %v4653_v24  ;;  %v1125_v25 = vld [vmem:[#allocation4 + $0x18] sm:$0xff] }
 0x1c3   :  { %v4656_v28 = vpop.f32.mrf.mxu0 }
 0x1c4   :  { %v664_v38 = vadd.f32 %v4655_v31, %v4425_v35 }
 0x1c5   :  { %v4657_v32 = vpop.f32.mrf.mxu0 }
 0x1c6   :  { %v4658_v39 = vadd.f32 %v4657_v32, %v4656_v28 }
 0x1c7   :  { %v4675_v26 = vpop.f32.mrf.mxu1 }
 0x1c8   :  { %v667_v48 = vadd.f32 %v4658_v39, %v4425_v35 }
 0x1c9   :  { %v4676_v27 = vpop.f32.mrf.mxu1 }
 0x1ca   :  { %v4677_v44 = vadd.f32 %v4676_v27, %v4675_v26  ;;  %v1126_v26 = vld [vmem:[#allocation4 + $0x20] sm:$0xff]  ;;  %v1127_v27 = vld [vmem:[#allocation4 + $0x28] sm:$0xff] }
 0x1cb   :  { %v4678_v29 = vpop.f32.mrf.mxu1 }
 0x1cc   :  { %v705_v51 = vadd.f32 %v4677_v44, %v656_v47  ;;  %v5573_v47 = vld [vmem:[#allocation2 + $0x248] sm:$0xff]  }
 0x1cd   :  { %v4679_v30 = vpop.f32.mrf.mxu1 }
 0x1ce   :  { %v4680_v40 = vadd.f32 %v4679_v30, %v4678_v29  ;;  %v723_v56 = vmul.f32 0.2, %v705_v51  ;;  %vm719_vm4 = vcmp.ge.f32.partialorder %v705_v51, 0.0 }
 0x1cf   :  { %v4681_v33 = vpop.f32.mrf.mxu1 }
 0x1d0   :  { %v708_v49 = vadd.f32 %v4680_v40, %v659_v43  ;;  %v5855_v62 = vsel %vm719_vm4, %v705_v51, %v723_v56  ;;  %v5575_v51 = vld [vmem:[#allocation2 + $0x258] sm:$0xff]   ;;  %v5579_v56 = vld [vmem:[#allocation2 + $0x170] sm:$0xff]  }
 0x1d1   :  { %v4682_v37 = vpop.f32.mrf.mxu1  ;;  %v731_v0 = vmul.f32 %v5855_v62, %v5855_v62 }
 0x1d2   :  { %v4683_v41 = vadd.f32 %v4682_v37, %v4681_v33  ;;  %v724_v54 = vmul.f32 0.2, %v708_v49  ;;  %vm720_vm3 = vcmp.ge.f32.partialorder %v708_v49, 0.0 }
 0x1d3   :  { %v4684_v42 = vpop.f32.mrf.mxu1 }
 0x1d4   :  { %v713_v45 = vadd.f32 %v4683_v41, %v664_v38  ;;  %v5850_v60 = vsel %vm720_vm3, %v708_v49, %v724_v54  ;;  %v5581_v49 = vld [vmem:[#allocation2 + $0x238] sm:$0xff]   ;;  %v5578_v54 = vld [vmem:[#allocation2 + $0x1b0] sm:$0xff]  }
 0x1d5   :  { %v4685_v46 = vpop.f32.mrf.mxu1  ;;  %v732_v63 = vmul.f32 %v5850_v60, %v5850_v60 }
 0x1d6   :  { %v4686_v50 = vadd.f32 %v4685_v46, %v4684_v42  ;;  %v725_v52 = vmul.f32 0.2, %v713_v45  ;;  %vm721_vm1 = vcmp.ge.f32.partialorder %v713_v45, 0.0  ;;  %v5572_v46 = vld [vmem:[#allocation2 + $0x240] sm:$0xff]  }
 0x1d8   :  { %v716_v53 = vadd.f32 %v4686_v50, %v667_v48  ;;  %v5846_v58 = vsel %vm721_vm1, %v713_v45, %v725_v52  ;;  %v5576_v48 = vld [vmem:[#allocation2 + $0x1b8] sm:$0xff]   ;;  %v5574_v50 = vld [vmem:[#allocation2 + $0x250] sm:$0xff]   ;;  %vm3820_vm1 = vcmask 31744  }
 0x1d9   :  { %v733_v61 = vmul.f32 %v5846_v58, %v5846_v58  ;;  %v5577_v52 = vld [vmem:[#allocation2 + $0x178] sm:$0xff]  }
 0x1da   :  { %vm722_vm2 = vcmp.ge.f32.partialorder %v716_v53, 0.0  ;;  %v726_v55 = vmul.f32 0.2, %v716_v53 }
 0x1dc   :  { %v5844_v57 = vsel %vm722_vm2, %v716_v53, %v726_v55  ;;  %v5583_v53 = vld [vmem:[#allocation2 + $0x1f8] sm:$0xff]   ;;  %v5585_v55 = vld [vmem:[#allocation2 + $0x230] sm:$0xff]  }
 0x1dd   :  { %v734_v59 = vmul.f32 %v5844_v57, %v5844_v57 }
 0x1df   :  { %764 = vmatprep.subr.mxu0 %v734_v59  ;;  %v5589_v59 = vld [vmem:[#allocation2 + $0x228] sm:$0xff]  }
 0x1e0   :  { %765 = vmatpush1.msra.mxu0 %v5844_v57 }
 0x1e1   :  { %766 = vmatprep.subr.mxu0 %v733_v61  ;;  %v5591_v61 = vld [vmem:[#allocation2 + $0x1e8] sm:$0xff]  }
 0x1e2   :  { %767 = vmatpush1.msra.mxu0 %v5846_v58 }
 0x1e3   :  { %768 = vmatprep.subr.mxu0 %v732_v63  ;;  %v5593_v63 = vld [vmem:[#allocation2 + $0x220] sm:$0xff]  }
 0x1e4   :  { %769 = vmatpush1.msra.mxu0 %v5850_v60 }
 0x1e5   :  { %770 = vmatprep.subr.mxu0 %v731_v0  ;;  %v5586_v0 = vld [vmem:[#allocation2 + $0x160] sm:$0xff]  }
 0x1e6   :  { %771 = vmatpush1.msra.mxu0 %v5855_v62 }
 0x1e7   :  { %4458 = vmatmul.mubr.msk.f32.vlgmr.msra.gmra.mxu0 %vm736_vm5, %v735_v1  ;;  %5106 = vmatprep.subr.mxu0 %v5734_v4  ;;  %v5595_v1 = vld [vmem:[#allocation2 + $0x1e0] sm:$0xff]  }
 0x1e8   :  { %5107 = vmatpush3.msra.mxu0 %v5784_v5  ;;  %5138 = vmatprep.mubr.msk.f32.mxu0 %vm5735_vm6, %v5734_v4 }
 0x1e9   :  { %5108 = vmatprep.subr.mxu0 %v5734_v4 }
 0x1ea   :  { %5109 = vmatpush3.msra.mxu0 %v5786_v6  ;;  %v974_v6 = vld [vmem:[#allocation4 + $0xb0] sm:$0xff] }
 0x1eb   :  { %5110 = vmatprep.subr.mxu0 %v5734_v4 }
 0x1ec   :  { %5111 = vmatpush3.msra.mxu0 %v5790_v7 }
 0x1ed   :  { %5112 = vmatprep.subr.mxu0 %v5734_v4 }
 0x1ee   :  { %5113 = vmatpush3.msra.mxu0 %v5794_v8 }
 0x1ef   :  { %5114 = vmatprep.subr.mxu0 %v5734_v4 }
 0x1f0   :  { %5115 = vmatpush3.msra.mxu0 %v5798_v9 }
 0x1f1   :  { %5116 = vmatprep.subr.mxu0 %v5734_v4 }
 0x1f2   :  { %5117 = vmatpush3.msra.mxu0 %v5802_v10 }
 0x1f3   :  { %5118 = vmatprep.subr.mxu0 %v5734_v4 }
 0x1f4   :  { %5119 = vmatpush3.msra.mxu0 %v5806_v11 }
 0x1f5   :  { %5120 = vmatprep.subr.mxu0 %v5734_v4 }
 0x1f6   :  { %5121 = vmatpush3.msra.mxu0 %v5810_v12 }
 0x1f7   :  { %5122 = vmatprep.subr.mxu0 %v5734_v4 }
 0x1f8   :  { %5123 = vmatpush3.msra.mxu0 %v5814_v13 }
 0x1f9   :  { %5124 = vmatprep.subr.mxu0 %v5734_v4 }
 0x1fa   :  { %5125 = vmatpush3.msra.mxu0 %v5818_v14 }
 0x1fb   :  { %5126 = vmatprep.subr.mxu0 %v5734_v4 }
 0x1fc   :  { %5127 = vmatpush3.msra.mxu0 %v5822_v15 }
 0x1fd   :  { %5128 = vmatprep.subr.mxu0 %v5734_v4 }
 0x1fe   :  { %5129 = vmatpush3.msra.mxu0 %v5826_v16 }
 0x1ff   :  { %5130 = vmatprep.subr.mxu0 %v5734_v4 }
 0x200   :  { %5131 = vmatpush3.msra.mxu0 %v5830_v17 }
 0x201   :  { %5132 = vmatprep.subr.mxu0 %v5734_v4 }
 0x202   :  { %5133 = vmatpush3.msra.mxu0 %v5834_v18 }
 0x203   :  { %5134 = vmatprep.subr.mxu0 %v5734_v4 }
 0x204   :  { %5135 = vmatpush3.msra.mxu0 %v5838_v19 }
 0x205   :  { %5136 = vmatprep.subr.mxu0 %v5734_v4 }
 0x206   :  { %5137 = vmatpush3.msra.mxu0 %v811_v2  ;;  %v5588_v2 = vld [vmem:[#allocation2 + $0x198] sm:$0xff]  }
 0x207   :  { %5151 = vmatprep.subr.bf16.mxu0 %v5734_v4 }
 0x2a7   :  { %v806_v3 = vpop.f32.mrf.mxu0 }
 0x2a8   :  { %5104 = vmatmul.mubr.f32.vlgmr.msra.gmra.mxu1 %v806_v3  ;;  %v5590_v3 = vld [vmem:[#allocation2 + $0x158] sm:$0xff]  }
 0x2a9   :  { %v808_v5 = vpop.f32.mrf.mxu0  ;;  %5143 = vmatprep.mubr.msk.f32.mxu1 %vm5735_vm6, %v5734_v4  ;;  %5142 = vmatpush3.msra.mxu1 %v974_v6 }
 0x2aa   :  { %5139 = vmatmul.mubr.f32.vlgmr.msra.gmra.mxu0 %v808_v5  ;;  %5146 = vmatprep.subr.mxu1 %v5734_v4  ;;  %v5592_v5 = vld [vmem:[#allocation2 + $0x190] sm:$0xff]  }
 0x2ab   :  { %5155 = vmatprep.mubr.msk.bf16.mxu0 %vm5735_vm6, %v5734_v4 }
 0x368   :  { %v893_v7 = vpop.f32.mrf.mxu1 }
 0x369   :  { %v897_v8 = vmul.f32 0.00390625, %v893_v7  ;;  %v5596_v7 = vld [vmem:[#allocation2 + $0x188] sm:$0xff]  }
 0x36a   :  { %v5105_v9 = vpop.f32.mrf.mxu1  ;;  %v964_v10 = vpop.f32.mrf.mxu0 }
 0x36b   :  { %v969_v11 = vmul.f32 %v897_v8, %v897_v8  ;;  %v968_v12 = vmul.f32 0.00390625, %v964_v10  ;;  %v1049_v18 = vsub.f32 0.0, %v897_v8  ;;  %v5597_v8 = vld [vmem:[#allocation2 + $0x218] sm:$0xff]   ;;  %v5598_v9 = vld [vmem:[#allocation2 + $0x148] sm:$0xff]  }
 0x36c   :  { %v5140_v13 = vpop.f32.mrf.mxu0  ;;  %v5599_v10 = vld [vmem:[#allocation2 + $0x1d8] sm:$0xff]  }
 0x36d   :  { %v970_v14 = vsub.f32 %v968_v12, %v969_v11  ;;  %v5600_v11 = vld [vmem:[#allocation2 + $0x180] sm:$0xff]   ;;  %v5601_v12 = vld [vmem:[#allocation2 + $0x210] sm:$0xff]  }
 0x36e   :  { %v5602_v13 = vld [vmem:[#allocation2 + $0x140] sm:$0xff]  }
 0x36f   :  { %v971_v15 = vmax.f32 %v970_v14, 0.0  ;;  %v5603_v14 = vld [vmem:[#allocation2 + $0x1d0] sm:$0xff]  }
 0x371   :  { %v972_v16 = vadd.f32 1e-05, %v971_v15  ;;  %v5604_v15 = vld [vmem:[#allocation2 + $0x208] sm:$0xff]  }
 0x373   :  { %5672 = vrsqrt.f32 %v972_v16  ;;  %v5605_v16 = vld [vmem:[#allocation2 + $0x1c8] sm:$0xff]  }
 0x380   :  { %v5673_v17 = vpop.eup %5672 }
 0x381   :  { %5144 = vmatmul.mubr.msk.f32.vlgmr.msra.gmra.mxu1 %vm975_vm7, %v5673_v17  ;;  %v1050_v19 = vmul.f32 %v5673_v17, %v1049_v18  ;;  %v5606_v17 = vld [vmem:[#allocation2 + $0x200] sm:$0xff]  }
 0x382   :  { %5147 = vmatpush3.msra.mxu1 %v974_v6  ;;  %5148 = vmatprep.mubr.msk.f32.mxu1 %vm5735_vm6, %v5734_v4  ;;  %v5594_v6 = vld [vmem:[#allocation2 + $0x150] sm:$0xff]   ;;  %v5607_v18 = vld [vmem:[#allocation2 + $0x1c0] sm:$0xff]  }
 0x385   :  { %5149 = vmatmul.mubr.msk.f32.vlgmr.msra.gmra.mxu1 %vm975_vm7, %v1050_v19 }
 0x386   :  { %1212 = vmatprep.mubr.f32.mxu1 %v5734_v4 }
 0x441   :  { %v1045_v20 = vpop.f32.mrf.mxu1 }
 0x443   :  { %v5145_v21 = vpop.f32.mrf.mxu1 }
 0x445   :  { %v1120_v22 = vpop.f32.mrf.mxu1 }
 0x446   :  { %4461 = vmatprep.subr.msk.mxu1 %vm1141_vm8, %v1120_v22 }
 0x447   :  { %v5150_v24 = vpop.f32.mrf.mxu1  ;;  %4462 = vmatpush1.msk.msra.mxu1 %vm1141_vm8, %v1045_v20 }
 0x448   :  { %4463 = vmatmul.mubr.msk.f32.vlgmr.msra.gmra.mxu1 %vm1128_vm9, %v1124_v23  ;;  %5159 = vmatprep.subr.bf16.mxu1 %v5734_v4 }
 0x449   :  { %1218 = vmatprep.mubr.f32.mxu1 %v5734_v4 }
 0x44c   :  { %4464 = vmatmul.mubr.msk.f32.gmra.mxu1 %vm1128_vm9, %v1125_v25 }
 0x44d   :  { %1224 = vmatprep.mubr.f32.mxu1 %v5734_v4 }
 0x450   :  { %4465 = vmatmul.mubr.msk.f32.gmra.mxu1 %vm1128_vm9, %v1126_v26 }
 0x451   :  { %1230 = vmatprep.mubr.f32.mxu1 %v5734_v4 }
 0x454   :  { %4466 = vmatmul.mubr.msk.f32.gmra.mxu1 %vm1128_vm9, %v1127_v27 }
 0x455   :  { %5163 = vmatprep.mubr.msk.bf16.mxu1 %vm5735_vm6, %v5734_v4 }
 0x508   :  { %v1214_v28 = vpop.f32.mrf.mxu1 }
 0x509   :  { %v1237_v39 = vmul.f32 %v1214_v28, %v5855_v62  ;;  %v5584_v62 = vld [vmem:[#allocation2 + $0x1a0] sm:$0xff]  }
 0x50a   :  { %v1216_v29 = vpop.f32.mrf.mxu1 }
 0x50b   :  { %v1241_v44 = vadd.f32 %v1237_v39, %v1216_v29  ;;  %v5946_v39 = vld [vmem:[#allocation4 + $0x150] sm:$0xff] }
 0x50c   :  { %v1220_v30 = vpop.f32.mrf.mxu1 }
 0x50d   :  { %v1238_v36 = vmul.f32 %v1220_v30, %v5850_v60  ;;  %v5582_v60 = vld [vmem:[#allocation2 + $0x168] sm:$0xff]  }
 0x50e   :  { %v1222_v31 = vpop.f32.mrf.mxu1 }
 0x50f   :  { %v1242_v42 = vadd.f32 %v1238_v36, %v1222_v31 }
 0x510   :  { %v1226_v32 = vpop.f32.mrf.mxu1 }
 0x511   :  { %v1239_v34 = vmul.f32 %v1226_v32, %v5846_v58  ;;  %v1245_v45 = vpack.c.bf16 %v1242_v42, %v1241_v44  ;;  %v5580_v58 = vld [vmem:[#allocation2 + $0x1a8] sm:$0xff]   ;;  %v5956_v42 = vld [vmem:[#allocation4 + $0x138] sm:$0xff] }
 0x512   :  { %v1228_v33 = vpop.f32.mrf.mxu1  ;;  %v5964_v44 = vld [vmem:[#allocation4 + $0x128] sm:$0xff] }
 0x513   :  { %v1243_v40 = vadd.f32 %v1239_v34, %v1228_v33 }
 0x514   :  { %v1232_v35 = vpop.f32.mrf.mxu1 }
 0x515   :  { %v1240_v37 = vmul.f32 %v1232_v35, %v5844_v57  ;;  %v5587_v57 = vld [vmem:[#allocation2 + $0x1f0] sm:$0xff]  }
 0x516   :  { %v1234_v38 = vpop.f32.mrf.mxu1 }
 0x517   :  { %v1244_v41 = vadd.f32 %v1240_v37, %v1234_v38 }
 0x519   :  { %v1246_v43 = vpack.c.bf16 %v1244_v41, %v1243_v40  ;;  %v5948_v40 = vld [vmem:[#allocation4 + $0x148] sm:$0xff]  ;;  %v5952_v41 = vld [vmem:[#allocation4 + $0x140] sm:$0xff] }
 0x51b   :  { %5152 = vmatpush3.bf16.msra.mxu0 %v1246_v43  ;;  %5160 = vmatpush3.bf16.msra.mxu1 %v1246_v43 }
 0x51c   :  { %5153 = vmatprep.subr.bf16.mxu0 %v5734_v4  ;;  %5161 = vmatprep.subr.bf16.mxu1 %v5734_v4 }
 0x51f   :  { %5154 = vmatpush3.bf16.msra.mxu0 %v1245_v45  ;;  %5162 = vmatpush3.bf16.msra.mxu1 %v1245_v45 }
 0x520   :  { %5167 = vmatprep.subr.bf16.mxu0 %v5734_v4  ;;  %5175 = vmatprep.subr.bf16.mxu1 %v5734_v4 }
 0x522   :  { %5156 = vmatmul.mubr.msk.bf16.vlgmr.msra.gmra.mxu0 %vm736_vm5, %v5572_v46  ;;  %5164 = vmatmul.mubr.msk.bf16.vlgmr.msra.gmra.mxu1 %vm736_vm5, %v5573_v47  ;;  %v5972_v46 = vld [vmem:[#allocation4 + $0x118] sm:$0xff]  ;;  %v5976_v47 = vld [vmem:[#allocation4 + $0x110] sm:$0xff] }
 0x523   :  { %5168 = vmatpush3.bf16.msra.mxu0 %v1246_v43  ;;  %5176 = vmatpush3.bf16.msra.mxu1 %v1246_v43  ;;  %v5960_v43 = vld [vmem:[#allocation4 + $0x130] sm:$0xff] }
 0x524   :  { %5169 = vmatprep.subr.bf16.mxu0 %v5734_v4  ;;  %5177 = vmatprep.subr.bf16.mxu1 %v5734_v4 }
 0x525   :  { %5171 = vmatprep.mubr.msk.bf16.mxu0 %vm5735_vm6, %v5734_v4  ;;  %5179 = vmatprep.mubr.msk.bf16.mxu1 %vm5735_vm6, %v5734_v4 }
 0x527   :  { %5170 = vmatpush3.bf16.msra.mxu0 %v1245_v45  ;;  %5178 = vmatpush3.bf16.msra.mxu1 %v1245_v45  ;;  %v5968_v45 = vld [vmem:[#allocation4 + $0x120] sm:$0xff] }
 0x528   :  { %4737 = vmatprep.subr.bf16.mxu0 %v5576_v48  ;;  %4759 = vmatprep.subr.bf16.mxu1 %v5581_v49  ;;  %v5980_v48 = vld [vmem:[#allocation4 + $0x108] sm:$0xff]  ;;  %v5984_v49 = vld [vmem:[#allocation4 + $0x100] sm:$0xff] }
 0x52a   :  { %5172 = vmatmul.mubr.msk.bf16.vlgmr.msra.gmra.mxu0 %vm736_vm5, %v5574_v50  ;;  %5180 = vmatmul.mubr.msk.bf16.vlgmr.msra.gmra.mxu1 %vm736_vm5, %v5575_v51  ;;  %v5988_v50 = vld [vmem:[#allocation4 + $0xf8] sm:$0xff]  ;;  %v5992_v51 = vld [vmem:[#allocation4 + $0xf0] sm:$0xff] }
 0x52b   :  { %4738 = vmatpush3.bf16.msra.mxu0 %v5577_v52  ;;  %4760 = vmatpush3.bf16.msra.mxu1 %v5583_v53  ;;  %v5996_v52 = vld [vmem:[#allocation4 + $0xe8] sm:$0xff]  ;;  %v6000_v53 = vld [vmem:[#allocation4 + $0xe0] sm:$0xff] }
 0x52c   :  { %4739 = vmatprep.subr.bf16.mxu0 %v5578_v54  ;;  %4761 = vmatprep.subr.bf16.mxu1 %v5585_v55 }
 0x52f   :  { %4740 = vmatpush3.bf16.msra.mxu0 %v5579_v56  ;;  %4762 = vmatpush3.bf16.msra.mxu1 %v5587_v57 }
 0x530   :  { %4741 = vmatprep.subr.bf16.mxu0 %v5580_v58  ;;  %4763 = vmatprep.subr.bf16.mxu1 %v5589_v59  ;;  %v4475_v58 = vld [vmem:[#allocation4 + $0xb8] ss:$0 sm:$0xff] }
 0x533   :  { %4742 = vmatpush3.bf16.msra.mxu0 %v5582_v60  ;;  %4764 = vmatpush3.bf16.msra.mxu1 %v5591_v61 }
 0x534   :  { %4743 = vmatprep.subr.bf16.mxu0 %v5584_v62  ;;  %4765 = vmatprep.subr.bf16.mxu1 %v5593_v63 }
 0x537   :  { %4744 = vmatpush3.bf16.msra.mxu0 %v5586_v0  ;;  %4766 = vmatpush3.bf16.msra.mxu1 %v5595_v1 }
 0x538   :  { %4745 = vmatprep.subr.bf16.mxu0 %v5588_v2  ;;  %4767 = vmatprep.subr.bf16.mxu1 %v5597_v8 }
 0x53b   :  { %4746 = vmatpush3.bf16.msra.mxu0 %v5590_v3  ;;  %4768 = vmatpush3.bf16.msra.mxu1 %v5599_v10 }
 0x53c   :  { %4747 = vmatprep.subr.bf16.mxu0 %v5592_v5  ;;  %4769 = vmatprep.subr.bf16.mxu1 %v5601_v12 }
 0x53f   :  { %4748 = vmatpush3.bf16.msra.mxu0 %v5594_v6  ;;  %4770 = vmatpush3.bf16.msra.mxu1 %v5603_v14  ;;  %v1806_v14 = vld [vmem:[#allocation4 + $0xc0] sm:$0x3] }
 0x540   :  { %4749 = vmatprep.subr.bf16.mxu0 %v5596_v7  ;;  %4771 = vmatprep.subr.bf16.mxu1 %v5604_v15  ;;  %v1882_v15 = vld [vmem:[#allocation4 + $0xd8] sm:$0xff] }
 0x543   :  { %4750 = vmatpush3.bf16.msra.mxu0 %v5598_v9  ;;  %4772 = vmatpush3.bf16.msra.mxu1 %v5605_v16 }
 0x544   :  { %4751 = vmatprep.subr.bf16.mxu0 %v5600_v11  ;;  %4773 = vmatprep.subr.bf16.mxu1 %v5606_v17 }
 0x547   :  { %4752 = vmatpush3.bf16.msra.mxu0 %v5602_v13  ;;  %4774 = vmatpush3.bf16.msra.mxu1 %v5607_v18  ;;  %v2046_v18 = vld [vmem:[#allocation4 + $0x160] sm:$0xff] }
 0x548   :  { %5183 = vmatprep.subr.mxu1 %v5734_v4 }
 0x5e2   :  { %v1291_v19 = vpop.f32.mrf.mxu0  ;;  %v1343_v20 = vpop.f32.mrf.mxu1 }
 0x5e4   :  { %v5157_v21 = vpop.f32.mrf.mxu0  ;;  %v5165_v22 = vpop.f32.mrf.mxu1 }
 0x5e6   :  { %v1294_v23 = vpop.f32.mrf.mxu0  ;;  %v1346_v24 = vpop.f32.mrf.mxu1 }
 0x5e7   :  { %v1298_v25 = vpack.c.bf16 %v1294_v23, %v1291_v19  ;;  %v1350_v26 = vpack.c.bf16 %v1346_v24, %v1343_v20  ;;  %v2045_v19 = vld [vmem:[#allocation4 + $0x158] sm:$0xff] }
 0x5e8   :  { %v5158_v27 = vpop.f32.mrf.mxu0  ;;  %v5166_v28 = vpop.f32.mrf.mxu1 }
 0x5e9   :  { %1748 = vmatprep.mubr.bf16.mxu0 %v1350_v26 }
 0x5ea   :  { %v1395_v29 = vpop.f32.mrf.mxu0  ;;  %v1447_v30 = vpop.f32.mrf.mxu1  ;;  %1749 = vmatmul.mubr.bf16.vlgmr.msra.gmra.mxu0 %v1298_v25 }
 0x5eb   :  { %1875 = vmatprep.mubr.f32.mxu0 %v5734_v4 }
 0x5ec   :  { %v5173_v31 = vpop.f32.mrf.mxu0  ;;  %v5181_v32 = vpop.f32.mrf.mxu1 }
 0x5ee   :  { %v1398_v33 = vpop.f32.mrf.mxu0  ;;  %v1450_v34 = vpop.f32.mrf.mxu1 }
 0x5ef   :  { %v1402_v35 = vpack.c.bf16 %v1398_v33, %v1395_v29  ;;  %v1454_v36 = vpack.c.bf16 %v1450_v34, %v1447_v30 }
 0x5f0   :  { %v5174_v37 = vpop.f32.mrf.mxu0  ;;  %v5182_v38 = vpop.f32.mrf.mxu1 }
 0x5f1   :  { %1789 = vmatprep.mubr.bf16.mxu1 %v1454_v36  ;;  %v2195_v36 = vld [vmem:[#allocation4 + $0xc8] sm:$0xff]  ;;  %v2196_v38 = vld [vmem:[#allocation4 + $0xd0] sm:$0xff] }
 0x5f2   :  { %1790 = vmatmul.mubr.bf16.vlgmr.msra.gmra.mxu1 %v1402_v35 }
 0x5f3   :  { %5215 = vmatprep.mubr.msk.f32.mxu1 %vm5735_vm6, %v5734_v4  ;;  %5184 = vmatpush3.msra.mxu1 %v5946_v39 }
 0x5f4   :  { %5185 = vmatprep.subr.mxu1 %v5734_v4 }
 0x5f5   :  { %5186 = vmatpush3.msra.mxu1 %v5948_v40 }
 0x5f6   :  { %5187 = vmatprep.subr.mxu1 %v5734_v4 }
 0x5f7   :  { %5188 = vmatpush3.msra.mxu1 %v5952_v41 }
 0x5f8   :  { %5189 = vmatprep.subr.mxu1 %v5734_v4 }
 0x5f9   :  { %5190 = vmatpush3.msra.mxu1 %v5956_v42 }
 0x5fa   :  { %5191 = vmatprep.subr.mxu1 %v5734_v4 }
 0x5fb   :  { %5192 = vmatpush3.msra.mxu1 %v5960_v43 }
 0x5fc   :  { %5193 = vmatprep.subr.mxu1 %v5734_v4 }
 0x5fd   :  { %5194 = vmatpush3.msra.mxu1 %v5964_v44 }
 0x5fe   :  { %5195 = vmatprep.subr.mxu1 %v5734_v4 }
 0x5ff   :  { %5196 = vmatpush3.msra.mxu1 %v5968_v45 }
 0x600   :  { %5197 = vmatprep.subr.mxu1 %v5734_v4 }
 0x601   :  { %5198 = vmatpush3.msra.mxu1 %v5972_v46 }
 0x602   :  { %5199 = vmatprep.subr.mxu1 %v5734_v4 }
 0x603   :  { %5200 = vmatpush3.msra.mxu1 %v5976_v47 }
 0x604   :  { %5201 = vmatprep.subr.mxu1 %v5734_v4 }
 0x605   :  { %5202 = vmatpush3.msra.mxu1 %v5980_v48 }
 0x606   :  { %5203 = vmatprep.subr.mxu1 %v5734_v4 }
 0x607   :  { %5204 = vmatpush3.msra.mxu1 %v5984_v49 }
 0x608   :  { %5205 = vmatprep.subr.mxu1 %v5734_v4 }
 0x609   :  { %5206 = vmatpush3.msra.mxu1 %v5988_v50 }
 0x60a   :  { %5207 = vmatprep.subr.mxu1 %v5734_v4 }
 0x60b   :  { %5208 = vmatpush3.msra.mxu1 %v5992_v51 }
 0x60c   :  { %5209 = vmatprep.subr.mxu1 %v5734_v4 }
 0x60d   :  { %5210 = vmatpush3.msra.mxu1 %v5996_v52 }
 0x60e   :  { %5211 = vmatprep.subr.mxu1 %v5734_v4 }
 0x60f   :  { %5212 = vmatpush3.msra.mxu1 %v6000_v53 }
 0x610   :  { %5213 = vmatprep.subr.mxu1 %v5734_v4 }
 0x611   :  { %5214 = vmatpush3.msra.mxu1 %v1882_v15 }
 0x612   :  { %5253 = vmatprep.subr.mxu1 %v5734_v4 }
 0x6aa   :  { %v4753_v54 = vpop.f32.mrf.mxu0 }
 0x6ac   :  { %v4754_v55 = vpop.f32.mrf.mxu0 }
 0x6ad   :  { %v4755_v57 = vadd.f32 %v4754_v55, %v4753_v54  ;;  %v5609_v54 = vld [vmem:[#allocation2 + $0x298] sm:$0xff]  }
 0x6ae   :  { %v4756_v56 = vpop.f32.mrf.mxu0  ;;  %v5615_v55 = vld [vmem:[#allocation2 + $0x318] sm:$0xff]  }
 0x6af   :  { %v1751_v62 = vadd.f32 %v4755_v57, %v4475_v58  ;;  %v5617_v57 = vld [vmem:[#allocation2 + $0x350] sm:$0xff]  }
 0x6b0   :  { %v4757_v59 = vpop.f32.mrf.mxu0 }
 0x6b1   :  { %v4758_v63 = vadd.f32 %v4757_v59, %v4756_v56  ;;  %v5610_v56 = vld [vmem:[#allocation2 + $0x2d0] sm:$0xff]  }
 0x6b2   :  { %v4775_v60 = vpop.f32.mrf.mxu1  ;;  %v5619_v59 = vld [vmem:[#allocation2 + $0x310] sm:$0xff]  }
 0x6b3   :  { %v1754_v5 = vadd.f32 %v4758_v63, %v4475_v58  ;;  %v5611_v58 = vld [vmem:[#allocation2 + $0x290] sm:$0xff]   ;;  %v5623_v63 = vld [vmem:[#allocation2 + $0x308] sm:$0xff]  }
 0x6b4   :  { %v4776_v61 = vpop.f32.mrf.mxu1 }
 0x6b5   :  { %v4777_v0 = vadd.f32 %v4776_v61, %v4775_v60  ;;  %v5612_v60 = vld [vmem:[#allocation2 + $0x2c8] sm:$0xff]  }
 0x6b6   :  { %v4778_v1 = vpop.f32.mrf.mxu1  ;;  %v5621_v61 = vld [vmem:[#allocation2 + $0x348] sm:$0xff]  }
 0x6b7   :  { %v1792_v2 = vadd.f32 %v4777_v0, %v1751_v62  ;;  %v5614_v62 = vld [vmem:[#allocation2 + $0x288] sm:$0xff]   ;;  %v5616_v0 = vld [vmem:[#allocation2 + $0x2c0] sm:$0xff]  }
 0x6b8   :  { %v4779_v3 = vpop.f32.mrf.mxu1 }
 0x6b9   :  { %v4780_v6 = vadd.f32 %v4779_v3, %v4778_v1  ;;  %v1800_v7 = vmul.f32 0.2, %v1792_v2  ;;  %vm1798_vm10 = vcmp.ge.f32.partialorder %v1792_v2, 0.0  ;;  %v5625_v1 = vld [vmem:[#allocation2 + $0x340] sm:$0xff]  }
 0x6ba   :  { %v5627_v3 = vld [vmem:[#allocation2 + $0x300] sm:$0xff]  }
 0x6bb   :  { %v1795_v8 = vadd.f32 %v4780_v6, %v1754_v5  ;;  %v6008_v11 = vsel %vm1798_vm10, %v1792_v2, %v1800_v7  ;;  %v5618_v2 = vld [vmem:[#allocation2 + $0x280] sm:$0xff]   ;;  %v5620_v5 = vld [vmem:[#allocation2 + $0x2b8] sm:$0xff]  }
 0x6bc   :  { %v1804_v13 = vmul.f32 %v6008_v11, %v6008_v11  ;;  %v5629_v6 = vld [vmem:[#allocation2 + $0x338] sm:$0xff]  }
 0x6bd   :  { %vm1799_vm11 = vcmp.ge.f32.partialorder %v1795_v8, 0.0  ;;  %v1801_v9 = vmul.f32 0.2, %v1795_v8  ;;  %v5622_v7 = vld [vmem:[#allocation2 + $0x278] sm:$0xff]  }
 0x6bf   :  { %v6006_v10 = vsel %vm1799_vm11, %v1795_v8, %v1801_v9  ;;  %v5631_v8 = vld [vmem:[#allocation2 + $0x2f8] sm:$0xff]   ;;  %v5624_v9 = vld [vmem:[#allocation2 + $0x2b0] sm:$0xff]  }
 0x6c0   :  { %v1805_v12 = vmul.f32 %v6006_v10, %v6006_v10 }
 0x6c2   :  { %1839 = vmatprep.subr.mxu0 %v1805_v12  ;;  %v5630_v12 = vld [vmem:[#allocation2 + $0x268] sm:$0xff]  }
 0x6c3   :  { %1840 = vmatpush1.msra.mxu0 %v6006_v10 }
 0x6c4   :  { %1841 = vmatprep.subr.mxu0 %v1804_v13  ;;  %v5632_v13 = vld [vmem:[#allocation2 + $0x2a0] sm:$0xff]  }
 0x6c5   :  { %1842 = vmatpush1.msra.mxu0 %v6008_v11 }
 0x6c6   :  { %4508 = vmatmul.mubr.msk.f32.vlgmr.msra.gmra.mxu0 %vm1807_vm12, %v1806_v14  ;;  %5218 = vmatprep.subr.mxu0 %v5734_v4  ;;  %v5633_v14 = vld [vmem:[#allocation2 + $0x330] sm:$0xff]  }
 0x6c7   :  { %5219 = vmatpush3.msra.mxu0 %v5946_v39  ;;  %5250 = vmatprep.mubr.msk.f32.mxu0 %vm5735_vm6, %v5734_v4 }
 0x6c8   :  { %5220 = vmatprep.subr.mxu0 %v5734_v4 }
 0x6c9   :  { %5221 = vmatpush3.msra.mxu0 %v5948_v40 }
 0x6ca   :  { %5222 = vmatprep.subr.mxu0 %v5734_v4 }
 0x6cb   :  { %5223 = vmatpush3.msra.mxu0 %v5952_v41 }
 0x6cc   :  { %5224 = vmatprep.subr.mxu0 %v5734_v4 }
 0x6cd   :  { %5225 = vmatpush3.msra.mxu0 %v5956_v42 }
 0x6ce   :  { %5226 = vmatprep.subr.mxu0 %v5734_v4 }
 0x6cf   :  { %5227 = vmatpush3.msra.mxu0 %v5960_v43 }
 0x6d0   :  { %5228 = vmatprep.subr.mxu0 %v5734_v4 }
 0x6d1   :  { %5229 = vmatpush3.msra.mxu0 %v5964_v44 }
 0x6d2   :  { %5230 = vmatprep.subr.mxu0 %v5734_v4 }
 0x6d3   :  { %5231 = vmatpush3.msra.mxu0 %v5968_v45 }
 0x6d4   :  { %5232 = vmatprep.subr.mxu0 %v5734_v4 }
 0x6d5   :  { %5233 = vmatpush3.msra.mxu0 %v5972_v46 }
 0x6d6   :  { %5234 = vmatprep.subr.mxu0 %v5734_v4 }
 0x6d7   :  { %5235 = vmatpush3.msra.mxu0 %v5976_v47 }
 0x6d8   :  { %5236 = vmatprep.subr.mxu0 %v5734_v4 }
 0x6d9   :  { %5237 = vmatpush3.msra.mxu0 %v5980_v48  ;;  %v2291_v48 = vld [vmem:[#allocation2 + $0x360] sm:$0xf] }
 0x6da   :  { %5238 = vmatprep.subr.mxu0 %v5734_v4 }
 0x6db   :  { %5239 = vmatpush3.msra.mxu0 %v5984_v49  ;;  %v2336_v49 = vld [vmem:[#allocation2 + $0x364] sm:$0xf] }
 0x6dc   :  { %5240 = vmatprep.subr.mxu0 %v5734_v4 }
 0x6dd   :  { %5241 = vmatpush3.msra.mxu0 %v5988_v50  ;;  %v5608_v50 = vld [vmem:[#allocation2 + $0x2d8] sm:$0xff]  }
 0x6de   :  { %5242 = vmatprep.subr.mxu0 %v5734_v4 }
 0x6df   :  { %5243 = vmatpush3.msra.mxu0 %v5992_v51  ;;  %v5613_v51 = vld [vmem:[#allocation2 + $0x358] sm:$0xff]  }
 0x6e0   :  { %5244 = vmatprep.subr.mxu0 %v5734_v4 }
 0x6e1   :  { %5245 = vmatpush3.msra.mxu0 %v5996_v52  ;;  %v2381_v52 = vld [vmem:[#allocation2 + $0x368] sm:$0xf] }
 0x6e2   :  { %5246 = vmatprep.subr.mxu0 %v5734_v4 }
 0x6e3   :  { %5247 = vmatpush3.msra.mxu0 %v6000_v53  ;;  %v2426_v53 = vld [vmem:[#allocation2 + $0x36c] sm:$0xf] }
 0x6e4   :  { %5248 = vmatprep.subr.mxu0 %v5734_v4 }
 0x6e5   :  { %5249 = vmatpush3.msra.mxu0 %v1882_v15  ;;  %v5634_v15 = vld [vmem:[#allocation2 + $0x260] sm:$0xff]  }
 0x6e6   :  { %5260 = vmatprep.subr.mxu0 %v5734_v4 }
 0x786   :  { %v1877_v16 = vpop.f32.mrf.mxu0 }
 0x787   :  { %5216 = vmatmul.mubr.f32.vlgmr.msra.gmra.mxu1 %v1877_v16  ;;  %v5635_v16 = vld [vmem:[#allocation2 + $0x2f0] sm:$0xff]  }
 0x788   :  { %v1879_v17 = vpop.f32.mrf.mxu0  ;;  %5257 = vmatprep.mubr.msk.f32.mxu1 %vm5735_vm6, %v5734_v4  ;;  %5254 = vmatpush3.msra.mxu1 %v2046_v18 }
 0x789   :  { %5251 = vmatmul.mubr.f32.vlgmr.msra.gmra.mxu0 %v1879_v17  ;;  %5255 = vmatprep.subr.mxu1 %v5734_v4  ;;  %v5636_v17 = vld [vmem:[#allocation2 + $0x328] sm:$0xff]  }
 0x78a   :  { %5264 = vmatprep.mubr.msk.f32.mxu0 %vm5735_vm6, %v5734_v4  ;;  %5261 = vmatpush3.msra.mxu0 %v2046_v18  ;;  %v5637_v18 = vld [vmem:[#allocation2 + $0x2e8] sm:$0xff]  }
 0x78b   :  { %5262 = vmatprep.subr.mxu0 %v5734_v4  ;;  %5256 = vmatpush3.msra.mxu1 %v2045_v19 }
 0x78c   :  { %5263 = vmatpush3.msra.mxu0 %v2045_v19  ;;  %v5638_v19 = vld [vmem:[#allocation2 + $0x320] sm:$0xff]  }
 0x78d   :  { %5267 = vmatprep.subr.bf16.mxu0 %v5734_v4 }
 0x847   :  { %v1964_v20 = vpop.f32.mrf.mxu1 }
 0x848   :  { %v1968_v21 = vmul.f32 0.015625, %v1964_v20  ;;  %v5639_v20 = vld [vmem:[#allocation2 + $0x2e0] sm:$0xff]  }
 0x849   :  { %v5217_v22 = vpop.f32.mrf.mxu1  ;;  %v2035_v23 = vpop.f32.mrf.mxu0 }
 0x84a   :  { %v2040_v24 = vmul.f32 %v1968_v21, %v1968_v21  ;;  %v2039_v25 = vmul.f32 0.015625, %v2035_v23  ;;  %v2120_v30 = vsub.f32 0.0, %v1968_v21 }
 0x84b   :  { %v5252_v26 = vpop.f32.mrf.mxu0 }
 0x84c   :  { %v2041_v27 = vsub.f32 %v2039_v25, %v2040_v24 }
 0x84e   :  { %v2042_v28 = vmax.f32 %v2041_v27, 0.0 }
 0x850   :  { %v2043_v29 = vadd.f32 1e-05, %v2042_v28 }
 0x852   :  { %5674 = vrsqrt.f32 %v2043_v29 }
 0x85f   :  { %v5675_v31 = vpop.eup %5674 }
 0x860   :  { %5258 = vmatmul.mubr.msk.f32.vlgmr.msra.gmra.mxu1 %vm1807_vm12, %v5675_v31  ;;  %v2121_v32 = vmul.f32 %v5675_v31, %v2120_v30 }
 0x861   :  { %2273 = vmatprep.mubr.f32.mxu1 %v5734_v4 }
 0x862   :  { %5265 = vmatmul.mubr.msk.f32.vlgmr.msra.gmra.mxu0 %vm1807_vm12, %v2121_v32 }
 0x863   :  { %5269 = vmatprep.mubr.msk.bf16.mxu0 %vm5735_vm6, %v5734_v4 }
 0x920   :  { %v2116_v33 = vpop.f32.mrf.mxu1 }
 0x922   :  { %v5259_v34 = vpop.f32.mrf.mxu1  ;;  %v2191_v35 = vpop.f32.mrf.mxu0 }
 0x923   :  { %4511 = vmatprep.subr.msk.mxu1 %vm1141_vm8, %v2191_v35 }
 0x924   :  { %v5266_v37 = vpop.f32.mrf.mxu0  ;;  %4512 = vmatpush1.msk.msra.mxu1 %vm1141_vm8, %v2116_v33 }
 0x925   :  { %4513 = vmatmul.mubr.msk.f32.vlgmr.msra.gmra.mxu1 %vm1128_vm9, %v2195_v36  ;;  %5273 = vmatprep.subr.bf16.mxu1 %v5734_v4 }
 0x926   :  { %2279 = vmatprep.mubr.f32.mxu1 %v5734_v4 }
 0x929   :  { %4514 = vmatmul.mubr.msk.f32.gmra.mxu1 %vm1128_vm9, %v2196_v38 }
 0x92a   :  { %5275 = vmatprep.mubr.msk.bf16.mxu1 %vm5735_vm6, %v5734_v4 }
 0x9e5   :  { %v2275_v39 = vpop.f32.mrf.mxu1 }
 0x9e6   :  { %v2286_v41 = vmul.f32 %v2275_v39, %v6008_v11  ;;  %v5628_v11 = vld [vmem:[#allocation2 + $0x2a8] sm:$0xff]  }
 0x9e7   :  { %v2277_v40 = vpop.f32.mrf.mxu1 }
 0x9e8   :  { %v2288_v45 = vadd.f32 %v2286_v41, %v2277_v40  ;;  %v6088_v41 = vld [vmem:[#allocation4 + $0x1f8] sm:$0xff] }
 0x9e9   :  { %v2281_v42 = vpop.f32.mrf.mxu1 }
 0x9ea   :  { %v2287_v43 = vmul.f32 %v2281_v42, %v6006_v10  ;;  %v5626_v10 = vld [vmem:[#allocation2 + $0x270] sm:$0xff]  }
 0x9eb   :  { %v2283_v44 = vpop.f32.mrf.mxu1  ;;  %v6090_v42 = vld [vmem:[#allocation4 + $0x1f0] sm:$0xff] }
 0x9ec   :  { %v2289_v46 = vadd.f32 %v2287_v43, %v2283_v44  ;;  %v6094_v43 = vld [vmem:[#allocation4 + $0x1e8] sm:$0xff]  ;;  %v6098_v44 = vld [vmem:[#allocation4 + $0x1e0] sm:$0xff] }
 0x9ee   :  { %v2290_v47 = vpack.c.bf16 %v2289_v46, %v2288_v45  ;;  %v6102_v45 = vld [vmem:[#allocation4 + $0x1d8] sm:$0xff]  ;;  %v6106_v46 = vld [vmem:[#allocation4 + $0x1d0] sm:$0xff] }
 0x9f0   :  { %5268 = vmatpush3.bf16.msra.mxu0 %v2290_v47  ;;  %5274 = vmatpush3.bf16.msra.mxu1 %v2290_v47 }
 0x9f1   :  { %5279 = vmatprep.subr.bf16.mxu0 %v5734_v4  ;;  %5285 = vmatprep.subr.bf16.mxu1 %v5734_v4 }
 0x9f3   :  { %5270 = vmatmul.mubr.msk.bf16.vlgmr.msra.gmra.mxu0 %vm1807_vm12, %v2291_v48  ;;  %5276 = vmatmul.mubr.msk.bf16.vlgmr.msra.gmra.mxu1 %vm1807_vm12, %v2336_v49  ;;  %v2899_v48 = vld [vmem:[#allocation4 + $0x1c0] sm:$0xff]  ;;  %v2898_v49 = vld [vmem:[#allocation4 + $0x1b8] sm:$0xff] }
 0x9f4   :  { %5280 = vmatpush3.bf16.msra.mxu0 %v2290_v47  ;;  %5286 = vmatpush3.bf16.msra.mxu1 %v2290_v47  ;;  %v6110_v47 = vld [vmem:[#allocation4 + $0x1c8] sm:$0xff] }
 0x9f5   :  { %5281 = vmatprep.mubr.msk.bf16.mxu0 %vm5735_vm6, %v5734_v4  ;;  %5287 = vmatprep.mubr.msk.bf16.mxu1 %vm5735_vm6, %v5734_v4 }
 0x9f6   :  { %4829 = vmatprep.subr.bf16.mxu0 %v5608_v50  ;;  %4851 = vmatprep.subr.bf16.mxu1 %v5613_v51  ;;  %v2897_v50 = vld [vmem:[#allocation4 + $0x1b0] sm:$0xff]  ;;  %v2896_v51 = vld [vmem:[#allocation4 + $0x1a8] sm:$0xff] }
 0x9fb   :  { %5282 = vmatmul.mubr.msk.bf16.vlgmr.msra.gmra.mxu0 %vm1807_vm12, %v2381_v52  ;;  %5288 = vmatmul.mubr.msk.bf16.vlgmr.msra.gmra.mxu1 %vm1807_vm12, %v2426_v53  ;;  %v2895_v52 = vld [vmem:[#allocation4 + $0x1a0] sm:$0xff]  ;;  %v2894_v53 = vld [vmem:[#allocation4 + $0x198] sm:$0xff] }
 0x9fc   :  { %4830 = vmatpush3.bf16.msra.mxu0 %v5609_v54  ;;  %4852 = vmatpush3.bf16.msra.mxu1 %v5615_v55  ;;  %v2893_v54 = vld [vmem:[#allocation4 + $0x190] sm:$0xff]  ;;  %v2892_v55 = vld [vmem:[#allocation4 + $0x188] sm:$0xff] }
 0x9fd   :  { %4831 = vmatprep.subr.bf16.mxu0 %v5610_v56  ;;  %4853 = vmatprep.subr.bf16.mxu1 %v5617_v57 }
 0xa00   :  { %4832 = vmatpush3.bf16.msra.mxu0 %v5611_v58  ;;  %4854 = vmatpush3.bf16.msra.mxu1 %v5619_v59 }
 0xa01   :  { %4833 = vmatprep.subr.bf16.mxu0 %v5612_v60  ;;  %4855 = vmatprep.subr.bf16.mxu1 %v5621_v61  ;;  %v4519_v61 = vld [vmem:[#allocation4 + $0x168] ss:$0 sm:$0xff] }
 0xa04   :  { %4834 = vmatpush3.bf16.msra.mxu0 %v5614_v62  ;;  %4856 = vmatpush3.bf16.msra.mxu1 %v5623_v63 }
 0xa05   :  { %4835 = vmatprep.subr.bf16.mxu0 %v5616_v0  ;;  %4857 = vmatprep.subr.bf16.mxu1 %v5625_v1 }
 0xa08   :  { %4836 = vmatpush3.bf16.msra.mxu0 %v5618_v2  ;;  %4858 = vmatpush3.bf16.msra.mxu1 %v5627_v3 }
 0xa09   :  { %4837 = vmatprep.subr.bf16.mxu0 %v5620_v5  ;;  %4859 = vmatprep.subr.bf16.mxu1 %v5629_v6 }
 0xa0c   :  { %4838 = vmatpush3.bf16.msra.mxu0 %v5622_v7  ;;  %4860 = vmatpush3.bf16.msra.mxu1 %v5631_v8 }
 0xa0d   :  { %4839 = vmatprep.subr.bf16.mxu0 %v5624_v9  ;;  %4861 = vmatprep.subr.bf16.mxu1 %v5633_v14  ;;  %v2816_v9 = vld [vmem:[#allocation4 + $0x170] sm:$0x3] }
 0xa0e   :  { %v3056_v14 = vld [vmem:[#allocation4 + $0x210] sm:$0xff] }
 0xa10   :  { %4840 = vmatpush3.bf16.msra.mxu0 %v5626_v10  ;;  %4862 = vmatpush3.bf16.msra.mxu1 %v5635_v16  ;;  %v2891_v10 = vld [vmem:[#allocation4 + $0x180] sm:$0xff] }
 0xa11   :  { %4841 = vmatprep.subr.bf16.mxu0 %v5628_v11  ;;  %4863 = vmatprep.subr.bf16.mxu1 %v5636_v17  ;;  %v3054_v16 = vld [vmem:[#allocation4 + $0x200] sm:$0xff] }
 0xa14   :  { %4842 = vmatpush3.bf16.msra.mxu0 %v5630_v12  ;;  %4864 = vmatpush3.bf16.msra.mxu1 %v5637_v18 }
 0xa15   :  { %4843 = vmatprep.subr.bf16.mxu0 %v5632_v13  ;;  %4865 = vmatprep.subr.bf16.mxu1 %v5638_v19  ;;  %v3057_v13 = vld [vmem:[#allocation4 + $0x218] sm:$0xff] }
 0xa18   :  { %4844 = vmatpush3.bf16.msra.mxu0 %v5634_v15  ;;  %4866 = vmatpush3.bf16.msra.mxu1 %v5639_v20  ;;  %v3055_v15 = vld [vmem:[#allocation4 + $0x208] sm:$0xff] }
 0xa19   :  { %5291 = vmatprep.subr.mxu1 %v5734_v4 }
 0xab3   :  { %v2329_v21 = vpop.f32.mrf.mxu0  ;;  %v2374_v22 = vpop.f32.mrf.mxu1 }
 0xab4   :  { %v2335_v23 = vpack.c.bf16 %v2329_v21, %v2329_v21  ;;  %v2380_v24 = vpack.c.bf16 %v2374_v22, %v2374_v22 }
 0xab5   :  { %v5271_v25 = vpop.f32.mrf.mxu0  ;;  %v5277_v26 = vpop.f32.mrf.mxu1 }
 0xab6   :  { %2764 = vmatprep.mubr.bf16.mxu0 %v2380_v24 }
 0xab7   :  { %v2332_v27 = vpop.f32.mrf.mxu0  ;;  %v2377_v28 = vpop.f32.mrf.mxu1  ;;  %2765 = vmatmul.mubr.bf16.vlgmr.msra.gmra.mxu0 %v2335_v23 }
 0xab8   :  { %2884 = vmatprep.mubr.f32.mxu0 %v5734_v4 }
 0xab9   :  { %v5272_v29 = vpop.f32.mrf.mxu0  ;;  %v5278_v30 = vpop.f32.mrf.mxu1 }
 0xabb   :  { %v2419_v31 = vpop.f32.mrf.mxu0  ;;  %v2464_v32 = vpop.f32.mrf.mxu1 }
 0xabc   :  { %v2425_v33 = vpack.c.bf16 %v2419_v31, %v2419_v31  ;;  %v2470_v34 = vpack.c.bf16 %v2464_v32, %v2464_v32 }
 0xabd   :  { %v5283_v35 = vpop.f32.mrf.mxu0  ;;  %v5289_v36 = vpop.f32.mrf.mxu1 }
 0xabe   :  { %2804 = vmatprep.mubr.bf16.mxu1 %v2470_v34 }
 0xabf   :  { %v2422_v37 = vpop.f32.mrf.mxu0  ;;  %v2467_v38 = vpop.f32.mrf.mxu1  ;;  %2805 = vmatmul.mubr.bf16.vlgmr.msra.gmra.mxu1 %v2425_v33  ;;  %v3206_v33 = vld [vmem:[#allocation4 + $0x178] sm:$0xff] }
 0xac0   :  { %5323 = vmatprep.mubr.msk.f32.mxu1 %vm5735_vm6, %v5734_v4  ;;  %5292 = vmatpush3.msra.mxu1 %v6088_v41 }
 0xac1   :  { %v5284_v39 = vpop.f32.mrf.mxu0  ;;  %v5290_v40 = vpop.f32.mrf.mxu1  ;;  %5293 = vmatprep.subr.mxu1 %v5734_v4 }
 0xac2   :  { %5294 = vmatpush3.msra.mxu1 %v6090_v42 }
 0xac3   :  { %5295 = vmatprep.subr.mxu1 %v5734_v4 }
 0xac4   :  { %5296 = vmatpush3.msra.mxu1 %v6094_v43 }
 0xac5   :  { %5297 = vmatprep.subr.mxu1 %v5734_v4 }
 0xac6   :  { %5298 = vmatpush3.msra.mxu1 %v6098_v44 }
 0xac7   :  { %5299 = vmatprep.subr.mxu1 %v5734_v4 }
 0xac8   :  { %5300 = vmatpush3.msra.mxu1 %v6102_v45 }
 0xac9   :  { %5301 = vmatprep.subr.mxu1 %v5734_v4 }
 0xaca   :  { %5302 = vmatpush3.msra.mxu1 %v6106_v46 }
 0xacb   :  { %5303 = vmatprep.subr.mxu1 %v5734_v4 }
 0xacc   :  { %5304 = vmatpush3.msra.mxu1 %v6110_v47 }
 0xacd   :  { %5305 = vmatprep.subr.mxu1 %v5734_v4 }
 0xace   :  { %5306 = vmatpush3.msra.mxu1 %v2899_v48 }
 0xacf   :  { %5307 = vmatprep.subr.mxu1 %v5734_v4 }
 0xad0   :  { %5308 = vmatpush3.msra.mxu1 %v2898_v49 }
 0xad1   :  { %5309 = vmatprep.subr.mxu1 %v5734_v4 }
 0xad2   :  { %5310 = vmatpush3.msra.mxu1 %v2897_v50 }
 0xad3   :  { %5311 = vmatprep.subr.mxu1 %v5734_v4 }
 0xad4   :  { %5312 = vmatpush3.msra.mxu1 %v2896_v51 }
 0xad5   :  { %5313 = vmatprep.subr.mxu1 %v5734_v4 }
 0xad6   :  { %5314 = vmatpush3.msra.mxu1 %v2895_v52 }
 0xad7   :  { %5315 = vmatprep.subr.mxu1 %v5734_v4 }
 0xad8   :  { %5316 = vmatpush3.msra.mxu1 %v2894_v53 }
 0xad9   :  { %5317 = vmatprep.subr.mxu1 %v5734_v4 }
 0xada   :  { %5318 = vmatpush3.msra.mxu1 %v2893_v54 }
 0xadb   :  { %5319 = vmatprep.subr.mxu1 %v5734_v4 }
 0xadc   :  { %5320 = vmatpush3.msra.mxu1 %v2892_v55 }
 0xadd   :  { %5321 = vmatprep.subr.mxu1 %v5734_v4 }
 0xade   :  { %5322 = vmatpush3.msra.mxu1 %v2891_v10 }
 0xadf   :  { %5361 = vmatprep.subr.mxu1 %v5734_v4 }
 0xb77   :  { %v4845_v56 = vpop.f32.mrf.mxu0 }
 0xb79   :  { %v4846_v57 = vpop.f32.mrf.mxu0 }
 0xb7a   :  { %v4847_v60 = vadd.f32 %v4846_v57, %v4845_v56  ;;  %v5655_v56 = vld [vmem:[#allocation2 + $0x418] sm:$0xff]   ;;  %v5648_v57 = vld [vmem:[#allocation2 + $0x3d0] sm:$0xff]  }
 0xb7b   :  { %v4848_v58 = vpop.f32.mrf.mxu0 }
 0xb7c   :  { %v2767_v0 = vadd.f32 %v4847_v60, %v4519_v61  ;;  %v5657_v58 = vld [vmem:[#allocation2 + $0x450] sm:$0xff]   ;;  %v5652_v61 = vld [vmem:[#allocation2 + $0x3c8] sm:$0xff]  }
 0xb7d   :  { %v4849_v59 = vpop.f32.mrf.mxu0  ;;  %v5659_v60 = vld [vmem:[#allocation2 + $0x410] sm:$0xff]  }
 0xb7e   :  { %v5650_v59 = vld [vmem:[#allocation2 + $0x390] sm:$0xff]  }
 0xb7f   :  { %v4867_v62 = vpop.f32.mrf.mxu1 }
 0xb81   :  { %v4868_v63 = vpop.f32.mrf.mxu1 }
 0xb82   :  { %v4869_v1 = vadd.f32 %v4868_v63, %v4867_v62  ;;  %v5661_v62 = vld [vmem:[#allocation2 + $0x448] sm:$0xff]  }
 0xb83   :  { %v4870_v2 = vpop.f32.mrf.mxu1  ;;  %v5654_v63 = vld [vmem:[#allocation2 + $0x388] sm:$0xff]  }
 0xb84   :  { %v2807_v3 = vadd.f32 %v4869_v1, %v2767_v0  ;;  %v5663_v0 = vld [vmem:[#allocation2 + $0x408] sm:$0xff]   ;;  %v5656_v1 = vld [vmem:[#allocation2 + $0x3c0] sm:$0xff]  }
 0xb85   :  { %v4871_v5 = vpop.f32.mrf.mxu1  ;;  %v5658_v2 = vld [vmem:[#allocation2 + $0x380] sm:$0xff]  }
 0xb86   :  { %vm2812_vm13 = vcmp.ge.f32.partialorder %v2807_v3, 0.0  ;;  %v2813_v6 = vmul.f32 0.2, %v2807_v3  ;;  %v5662_v5 = vld [vmem:[#allocation2 + $0x378] sm:$0xff]  }
 0xb88   :  { %v6124_v7 = vsel %vm2812_vm13, %v2807_v3, %v2813_v6  ;;  %v5660_v3 = vld [vmem:[#allocation2 + $0x3b8] sm:$0xff]   ;;  %v5664_v6 = vld [vmem:[#allocation2 + $0x3b0] sm:$0xff]  }
 0xb89   :  { %v2815_v8 = vmul.f32 %v6124_v7, %v6124_v7 }
 0xb8b   :  { %2850 = vmatprep.subr.mxu0 %v2815_v8  ;;  %v5666_v8 = vld [vmem:[#allocation2 + $0x370] sm:$0xff]  }
 0xb8c   :  { %2851 = vmatpush1.msra.mxu0 %v6124_v7 }
 0xb8d   :  { %4552 = vmatmul.mubr.msk.f32.vlgmr.msra.gmra.mxu0 %vm975_vm7, %v2816_v9  ;;  %5326 = vmatprep.subr.mxu0 %v5734_v4  ;;  %v5667_v9 = vld [vmem:[#allocation2 + $0x400] sm:$0xff]  }
 0xb8e   :  { %5327 = vmatpush3.msra.mxu0 %v6088_v41  ;;  %5358 = vmatprep.mubr.msk.f32.mxu0 %vm5735_vm6, %v5734_v4  ;;  %v3290_v41 = vld [vmem:[#allocation2 + $0x470] sm:$0x3] }
 0xb8f   :  { %5328 = vmatprep.subr.mxu0 %v5734_v4 }
 0xb90   :  { %5329 = vmatpush3.msra.mxu0 %v6090_v42  ;;  %v3339_v42 = vld [vmem:[#allocation2 + $0x474] sm:$0x3] }
 0xb91   :  { %5330 = vmatprep.subr.mxu0 %v5734_v4 }
 0xb92   :  { %5331 = vmatpush3.msra.mxu0 %v6094_v43  ;;  %v5640_v43 = vld [vmem:[#allocation2 + $0x3e8] sm:$0xff]  }
 0xb93   :  { %5332 = vmatprep.subr.mxu0 %v5734_v4 }
 0xb94   :  { %5333 = vmatpush3.msra.mxu0 %v6098_v44  ;;  %v5645_v44 = vld [vmem:[#allocation2 + $0x468] sm:$0xff]  }
 0xb95   :  { %5334 = vmatprep.subr.mxu0 %v5734_v4 }
 0xb96   :  { %5335 = vmatpush3.msra.mxu0 %v6102_v45  ;;  %v3384_v45 = vld [vmem:[#allocation2 + $0x478] sm:$0x3] }
 0xb97   :  { %5336 = vmatprep.subr.mxu0 %v5734_v4 }
 0xb98   :  { %5337 = vmatpush3.msra.mxu0 %v6106_v46  ;;  %v3429_v46 = vld [vmem:[#allocation2 + $0x47c] sm:$0x3] }
 0xb99   :  { %5338 = vmatprep.subr.mxu0 %v5734_v4 }
 0xb9a   :  { %5339 = vmatpush3.msra.mxu0 %v6110_v47  ;;  %v5641_v47 = vld [vmem:[#allocation2 + $0x3a8] sm:$0xff]  }
 0xb9b   :  { %5340 = vmatprep.subr.mxu0 %v5734_v4 }
 0xb9c   :  { %5341 = vmatpush3.msra.mxu0 %v2899_v48  ;;  %v5647_v48 = vld [vmem:[#allocation2 + $0x428] sm:$0xff]  }
 0xb9d   :  { %5342 = vmatprep.subr.mxu0 %v5734_v4 }
 0xb9e   :  { %5343 = vmatpush3.msra.mxu0 %v2898_v49  ;;  %v5642_v49 = vld [vmem:[#allocation2 + $0x3e0] sm:$0xff]  }
 0xb9f   :  { %5344 = vmatprep.subr.mxu0 %v5734_v4 }
 0xba0   :  { %5345 = vmatpush3.msra.mxu0 %v2897_v50  ;;  %v5649_v50 = vld [vmem:[#allocation2 + $0x460] sm:$0xff]  }
 0xba1   :  { %5346 = vmatprep.subr.mxu0 %v5734_v4 }
 0xba2   :  { %5347 = vmatpush3.msra.mxu0 %v2896_v51  ;;  %v5643_v51 = vld [vmem:[#allocation2 + $0x3a0] sm:$0xff]  }
 0xba3   :  { %5348 = vmatprep.subr.mxu0 %v5734_v4 }
 0xba4   :  { %5349 = vmatpush3.msra.mxu0 %v2895_v52  ;;  %v5651_v52 = vld [vmem:[#allocation2 + $0x420] sm:$0xff]  }
 0xba5   :  { %5350 = vmatprep.subr.mxu0 %v5734_v4 }
 0xba6   :  { %5351 = vmatpush3.msra.mxu0 %v2894_v53  ;;  %v5644_v53 = vld [vmem:[#allocation2 + $0x3d8] sm:$0xff]  }
 0xba7   :  { %5352 = vmatprep.subr.mxu0 %v5734_v4 }
 0xba8   :  { %5353 = vmatpush3.msra.mxu0 %v2893_v54  ;;  %v5653_v54 = vld [vmem:[#allocation2 + $0x458] sm:$0xff]  }
 0xba9   :  { %5354 = vmatprep.subr.mxu0 %v5734_v4 }
 0xbaa   :  { %5355 = vmatpush3.msra.mxu0 %v2892_v55  ;;  %v5646_v55 = vld [vmem:[#allocation2 + $0x398] sm:$0xff]  }
 0xbab   :  { %5356 = vmatprep.subr.mxu0 %v5734_v4 }
 0xbac   :  { %5357 = vmatpush3.msra.mxu0 %v2891_v10  ;;  %v5668_v10 = vld [vmem:[#allocation2 + $0x438] sm:$0xff]  }
 0xbad   :  { %5372 = vmatprep.subr.mxu0 %v5734_v4 }
 0xc4d   :  { %v2886_v11 = vpop.f32.mrf.mxu0 }
 0xc4e   :  { %5324 = vmatmul.mubr.f32.vlgmr.msra.gmra.mxu1 %v2886_v11  ;;  %v5669_v11 = vld [vmem:[#allocation2 + $0x3f8] sm:$0xff]  }
 0xc4f   :  { %v2888_v12 = vpop.f32.mrf.mxu0  ;;  %5369 = vmatprep.mubr.msk.f32.mxu1 %vm5735_vm6, %v5734_v4  ;;  %5362 = vmatpush3.msra.mxu1 %v3057_v13 }
 0xc50   :  { %5359 = vmatmul.mubr.f32.vlgmr.msra.gmra.mxu0 %v2888_v12  ;;  %5363 = vmatprep.subr.mxu1 %v5734_v4  ;;  %v5670_v12 = vld [vmem:[#allocation2 + $0x430] sm:$0xff]  }
 0xc51   :  { %5380 = vmatprep.mubr.msk.f32.mxu0 %vm5735_vm6, %v5734_v4  ;;  %5373 = vmatpush3.msra.mxu0 %v3057_v13  ;;  %v5671_v13 = vld [vmem:[#allocation2 + $0x3f0] sm:$0xff]  }
 0xc52   :  { %5374 = vmatprep.subr.mxu0 %v5734_v4  ;;  %5364 = vmatpush3.msra.mxu1 %v3056_v14 }
 0xc53   :  { %5375 = vmatpush3.msra.mxu0 %v3056_v14  ;;  %5365 = vmatprep.subr.mxu1 %v5734_v4 }
 0xc54   :  { %5376 = vmatprep.subr.mxu0 %v5734_v4  ;;  %5366 = vmatpush3.msra.mxu1 %v3055_v15 }
 0xc55   :  { %5377 = vmatpush3.msra.mxu0 %v3055_v15  ;;  %5367 = vmatprep.subr.mxu1 %v5734_v4 }
 0xc56   :  { %5378 = vmatprep.subr.mxu0 %v5734_v4  ;;  %5368 = vmatpush3.msra.mxu1 %v3054_v16 }
 0xc57   :  { %5379 = vmatpush3.msra.mxu0 %v3054_v16 }
 0xc58   :  { %5383 = vmatprep.subr.bf16.mxu0 %v5734_v4 }
 0xd0e   :  { %v2973_v17 = vpop.f32.mrf.mxu1 }
 0xd0f   :  { %v2977_v18 = vmul.f32 0.0625, %v2973_v17 }
 0xd10   :  { %v5325_v19 = vpop.f32.mrf.mxu1  ;;  %v3044_v20 = vpop.f32.mrf.mxu0 }
 0xd11   :  { %v3049_v21 = vmul.f32 %v2977_v18, %v2977_v18  ;;  %v3048_v22 = vmul.f32 0.0625, %v3044_v20  ;;  %v3131_v27 = vsub.f32 0.0, %v2977_v18 }
 0xd12   :  { %v5360_v23 = vpop.f32.mrf.mxu0 }
 0xd13   :  { %v3050_v24 = vsub.f32 %v3048_v22, %v3049_v21 }
 0xd15   :  { %v3051_v25 = vmax.f32 %v3050_v24, 0.0 }
 0xd17   :  { %v3052_v26 = vadd.f32 1e-05, %v3051_v25 }
 0xd19   :  { %5676 = vrsqrt.f32 %v3052_v26 }
 0xd26   :  { %v5677_v28 = vpop.eup %5676 }
 0xd27   :  { %5370 = vmatmul.mubr.msk.f32.vlgmr.msra.gmra.mxu1 %vm736_vm5, %v5677_v28  ;;  %v3132_v29 = vmul.f32 %v5677_v28, %v3131_v27 }
 0xd28   :  { %3280 = vmatprep.mubr.f32.mxu1 %v5734_v4 }
 0xd29   :  { %5381 = vmatmul.mubr.msk.f32.vlgmr.msra.gmra.mxu0 %vm736_vm5, %v3132_v29 }
 0xd2a   :  { %5385 = vmatprep.mubr.msk.bf16.mxu0 %vm5735_vm6, %v5734_v4 }
 0xde7   :  { %v3127_v30 = vpop.f32.mrf.mxu1 }
 0xde9   :  { %v5371_v31 = vpop.f32.mrf.mxu1  ;;  %v3202_v32 = vpop.f32.mrf.mxu0 }
 0xdea   :  { %4555 = vmatprep.subr.msk.mxu1 %vm1141_vm8, %v3202_v32 }
 0xdeb   :  { %v5382_v34 = vpop.f32.mrf.mxu0  ;;  %4556 = vmatpush1.msk.msra.mxu1 %vm1141_vm8, %v3127_v30 }
 0xdec   :  { %4557 = vmatmul.mubr.msk.f32.vlgmr.msra.gmra.mxu1 %vm1128_vm9, %v3206_v33  ;;  %5389 = vmatprep.subr.bf16.mxu1 %v5734_v4  ;;  %v6195_v34 = vld [vmem:[#allocation4 + $0x2b0] sm:$0xff] }
 0xded   :  { %5391 = vmatprep.mubr.msk.bf16.mxu1 %vm5735_vm6, %v5734_v4 }
 0xeac   :  { %v3282_v35 = vpop.f32.mrf.mxu1 }
 0xead   :  { %v3287_v36 = vmul.f32 %v3282_v35, %v6124_v7  ;;  %v5665_v7 = vld [vmem:[#allocation2 + $0x440] sm:$0xff]   ;;  %v6197_v35 = vld [vmem:[#allocation4 + $0x2a8] sm:$0xff] }
 0xeae   :  { %v3284_v37 = vpop.f32.mrf.mxu1 }
 0xeaf   :  { %v3288_v38 = vadd.f32 %v3287_v36, %v3284_v37  ;;  %v6201_v36 = vld [vmem:[#allocation4 + $0x2a0] sm:$0xff]  ;;  %v6205_v37 = vld [vmem:[#allocation4 + $0x298] sm:$0xff] }
 0xeb1   :  { %v3289_v39 = vpack.c.bf16 %v3288_v38, %v3288_v38  ;;  %v6209_v38 = vld [vmem:[#allocation4 + $0x290] sm:$0xff] }
 0xeb3   :  { %v3296_v40 = vsel %vm3294_vm14, %v3289_v39, 0  ;;  %v6213_v39 = vld [vmem:[#allocation4 + $0x288] sm:$0xff] }
 0xeb4   :  { %5384 = vmatpush3.bf16.msra.mxu0 %v3296_v40  ;;  %5390 = vmatpush3.bf16.msra.mxu1 %v3296_v40 }
 0xeb5   :  { %5395 = vmatprep.subr.bf16.mxu0 %v5734_v4  ;;  %5401 = vmatprep.subr.bf16.mxu1 %v5734_v4 }
 0xeb7   :  { %5386 = vmatmul.mubr.msk.bf16.vlgmr.msra.gmra.mxu0 %vm975_vm7, %v3290_v41  ;;  %5392 = vmatmul.mubr.msk.bf16.vlgmr.msra.gmra.mxu1 %vm975_vm7, %v3339_v42  ;;  %v6221_v41 = vld [vmem:[#allocation4 + $0x278] sm:$0xff]  ;;  %v3908_v42 = vld [vmem:[#allocation4 + $0x270] sm:$0xff] }
 0xeb8   :  { %5396 = vmatpush3.bf16.msra.mxu0 %v3296_v40  ;;  %5402 = vmatpush3.bf16.msra.mxu1 %v3296_v40  ;;  %v6217_v40 = vld [vmem:[#allocation4 + $0x280] sm:$0xff] }
 0xeb9   :  { %5397 = vmatprep.mubr.msk.bf16.mxu0 %vm5735_vm6, %v5734_v4  ;;  %5403 = vmatprep.mubr.msk.bf16.mxu1 %vm5735_vm6, %v5734_v4 }
 0xeba   :  { %4925 = vmatprep.subr.bf16.mxu0 %v5640_v43  ;;  %4947 = vmatprep.subr.bf16.mxu1 %v5645_v44  ;;  %v3907_v43 = vld [vmem:[#allocation4 + $0x268] sm:$0xff]  ;;  %v3906_v44 = vld [vmem:[#allocation4 + $0x260] sm:$0xff] }
 0xebf   :  { %5398 = vmatmul.mubr.msk.bf16.vlgmr.msra.gmra.mxu0 %vm975_vm7, %v3384_v45  ;;  %5404 = vmatmul.mubr.msk.bf16.vlgmr.msra.gmra.mxu1 %vm975_vm7, %v3429_v46  ;;  %v3905_v45 = vld [vmem:[#allocation4 + $0x258] sm:$0xff]  ;;  %v3904_v46 = vld [vmem:[#allocation4 + $0x250] sm:$0xff] }
 0xec0   :  { %4926 = vmatpush3.bf16.msra.mxu0 %v5641_v47  ;;  %4948 = vmatpush3.bf16.msra.mxu1 %v5647_v48  ;;  %v3903_v47 = vld [vmem:[#allocation4 + $0x248] sm:$0xff]  ;;  %v3902_v48 = vld [vmem:[#allocation4 + $0x240] sm:$0xff] }
 0xec1   :  { %4927 = vmatprep.subr.bf16.mxu0 %v5642_v49  ;;  %4949 = vmatprep.subr.bf16.mxu1 %v5649_v50 }
 0xec4   :  { %4928 = vmatpush3.bf16.msra.mxu0 %v5643_v51  ;;  %4950 = vmatpush3.bf16.msra.mxu1 %v5651_v52 }
 0xec5   :  { %4929 = vmatprep.subr.bf16.mxu0 %v5644_v53  ;;  %4951 = vmatprep.subr.bf16.mxu1 %v5653_v54  ;;  %v4562_v54 = vld [vmem:[#allocation4 + $0x220] ss:$0 sm:$0xff] }
 0xec8   :  { %4930 = vmatpush3.bf16.msra.mxu0 %v5646_v55  ;;  %4952 = vmatpush3.bf16.msra.mxu1 %v5655_v56 }
 0xec9   :  { %4931 = vmatprep.subr.bf16.mxu0 %v5648_v57  ;;  %4953 = vmatprep.subr.bf16.mxu1 %v5657_v58 }
 0xecc   :  { %4932 = vmatpush3.bf16.msra.mxu0 %v5650_v59  ;;  %4954 = vmatpush3.bf16.msra.mxu1 %v5659_v60 }
 0xecd   :  { %4933 = vmatprep.subr.bf16.mxu0 %v5652_v61  ;;  %4955 = vmatprep.subr.bf16.mxu1 %v5661_v62 }
 0xed0   :  { %4934 = vmatpush3.bf16.msra.mxu0 %v5654_v63  ;;  %4956 = vmatpush3.bf16.msra.mxu1 %v5663_v0 }
 0xed1   :  { %4935 = vmatprep.subr.bf16.mxu0 %v5656_v1  ;;  %4957 = vmatprep.subr.bf16.mxu1 %v5665_v7  ;;  %v3819_v1 = vld [vmem:[#allocation4 + $0x228] sm:$0x3] }
 0xed2   :  { %v4070_v7 = vld [vmem:[#allocation4 + $0x2e8] sm:$0xff] }
 0xed4   :  { %4936 = vmatpush3.bf16.msra.mxu0 %v5658_v2  ;;  %4958 = vmatpush3.bf16.msra.mxu1 %v5667_v9  ;;  %v3901_v2 = vld [vmem:[#allocation4 + $0x238] sm:$0xff] }
 0xed5   :  { %4937 = vmatprep.subr.bf16.mxu0 %v5660_v3  ;;  %4959 = vmatprep.subr.bf16.mxu1 %v5668_v10  ;;  %v4068_v9 = vld [vmem:[#allocation4 + $0x2d8] sm:$0xff]  ;;  %v4067_v10 = vld [vmem:[#allocation4 + $0x2d0] sm:$0xff] }
 0xed8   :  { %4938 = vmatpush3.bf16.msra.mxu0 %v5662_v5  ;;  %4960 = vmatpush3.bf16.msra.mxu1 %v5669_v11  ;;  %v4066_v11 = vld [vmem:[#allocation4 + $0x2c8] sm:$0xff] }
 0xed9   :  { %4939 = vmatprep.subr.bf16.mxu0 %v5664_v6  ;;  %4961 = vmatprep.subr.bf16.mxu1 %v5670_v12  ;;  %v4071_v6 = vld [vmem:[#allocation4 + $0x2f0] sm:$0xff]  ;;  %v4065_v12 = vld [vmem:[#allocation4 + $0x2c0] sm:$0xff] }
 0xedc   :  { %4940 = vmatpush3.bf16.msra.mxu0 %v5666_v8  ;;  %4962 = vmatpush3.bf16.msra.mxu1 %v5671_v13  ;;  %v4069_v8 = vld [vmem:[#allocation4 + $0x2e0] sm:$0xff]  ;;  %v4064_v13 = vld [vmem:[#allocation4 + $0x2b8] sm:$0xff] }
 0xedd   :  { %5407 = vmatprep.subr.mxu1 %v5734_v4 }
 0xf77   :  { %v3332_v14 = vpop.f32.mrf.mxu0  ;;  %v3377_v15 = vpop.f32.mrf.mxu1 }
 0xf78   :  { %v3338_v16 = vpack.c.bf16 %v3332_v14, %v3332_v14  ;;  %v3383_v17 = vpack.c.bf16 %v3377_v15, %v3377_v15 }
 0xf79   :  { %v5387_v18 = vpop.f32.mrf.mxu0  ;;  %v5393_v19 = vpop.f32.mrf.mxu1 }
 0xf7a   :  { %3767 = vmatprep.mubr.bf16.mxu0 %v3383_v17 }
 0xf7b   :  { %v3335_v20 = vpop.f32.mrf.mxu0  ;;  %v3380_v21 = vpop.f32.mrf.mxu1  ;;  %3768 = vmatmul.mubr.bf16.vlgmr.msra.gmra.mxu0 %v3338_v16 }
 0xf7c   :  { %3894 = vmatprep.mubr.f32.mxu0 %v5734_v4 }
 0xf7d   :  { %v5388_v22 = vpop.f32.mrf.mxu0  ;;  %v5394_v23 = vpop.f32.mrf.mxu1 }
 0xf7f   :  { %v3422_v24 = vpop.f32.mrf.mxu0  ;;  %v3467_v25 = vpop.f32.mrf.mxu1 }
 0xf80   :  { %v3428_v26 = vpack.c.bf16 %v3422_v24, %v3422_v24  ;;  %v3473_v27 = vpack.c.bf16 %v3467_v25, %v3467_v25 }
 0xf81   :  { %v5399_v28 = vpop.f32.mrf.mxu0  ;;  %v5405_v29 = vpop.f32.mrf.mxu1 }
 0xf82   :  { %3807 = vmatprep.mubr.bf16.mxu1 %v3473_v27 }
 0xf83   :  { %v3425_v30 = vpop.f32.mrf.mxu0  ;;  %v3470_v31 = vpop.f32.mrf.mxu1  ;;  %3808 = vmatmul.mubr.bf16.vlgmr.msra.gmra.mxu1 %v3428_v26 }
 0xf84   :  { %5439 = vmatprep.mubr.msk.f32.mxu1 %vm5735_vm6, %v5734_v4  ;;  %5408 = vmatpush3.msra.mxu1 %v6195_v34  ;;  %v4220_v30 = vld [vmem:[#allocation4 + $0x230] sm:$0xf] }
 0xf85   :  { %v5400_v32 = vpop.f32.mrf.mxu0  ;;  %v5406_v33 = vpop.f32.mrf.mxu1  ;;  %5409 = vmatprep.subr.mxu1 %v5734_v4 }
 0xf86   :  { %5410 = vmatpush3.msra.mxu1 %v6197_v35 }
 0xf87   :  { %5411 = vmatprep.subr.mxu1 %v5734_v4 }
 0xf88   :  { %5412 = vmatpush3.msra.mxu1 %v6201_v36 }
 0xf89   :  { %5413 = vmatprep.subr.mxu1 %v5734_v4 }
 0xf8a   :  { %5414 = vmatpush3.msra.mxu1 %v6205_v37 }
 0xf8b   :  { %5415 = vmatprep.subr.mxu1 %v5734_v4 }
 0xf8c   :  { %5416 = vmatpush3.msra.mxu1 %v6209_v38 }
 0xf8d   :  { %5417 = vmatprep.subr.mxu1 %v5734_v4 }
 0xf8e   :  { %5418 = vmatpush3.msra.mxu1 %v6213_v39 }
 0xf8f   :  { %5419 = vmatprep.subr.mxu1 %v5734_v4 }
 0xf90   :  { %5420 = vmatpush3.msra.mxu1 %v6217_v40 }
 0xf91   :  { %5421 = vmatprep.subr.mxu1 %v5734_v4 }
 0xf92   :  { %5422 = vmatpush3.msra.mxu1 %v6221_v41 }
 0xf93   :  { %5423 = vmatprep.subr.mxu1 %v5734_v4 }
 0xf94   :  { %5424 = vmatpush3.msra.mxu1 %v3908_v42 }
 0xf95   :  { %5425 = vmatprep.subr.mxu1 %v5734_v4 }
 0xf96   :  { %5426 = vmatpush3.msra.mxu1 %v3907_v43 }
 0xf97   :  { %5427 = vmatprep.subr.mxu1 %v5734_v4 }
 0xf98   :  { %5428 = vmatpush3.msra.mxu1 %v3906_v44 }
 0xf99   :  { %5429 = vmatprep.subr.mxu1 %v5734_v4 }
 0xf9a   :  { %5430 = vmatpush3.msra.mxu1 %v3905_v45 }
 0xf9b   :  { %5431 = vmatprep.subr.mxu1 %v5734_v4 }
 0xf9c   :  { %5432 = vmatpush3.msra.mxu1 %v3904_v46 }
 0xf9d   :  { %5433 = vmatprep.subr.mxu1 %v5734_v4 }
 0xf9e   :  { %5434 = vmatpush3.msra.mxu1 %v3903_v47 }
 0xf9f   :  { %5435 = vmatprep.subr.mxu1 %v5734_v4 }
 0xfa0   :  { %5436 = vmatpush3.msra.mxu1 %v3902_v48 }
 0xfa1   :  { %5437 = vmatprep.subr.mxu1 %v5734_v4 }
 0xfa2   :  { %5438 = vmatpush3.msra.mxu1 %v3901_v2 }
 0xfa3   :  { %5477 = vmatprep.subr.mxu1 %v5734_v4 }
0x103b   :  { %v4941_v49 = vpop.f32.mrf.mxu0 }
0x103d   :  { %v4942_v50 = vpop.f32.mrf.mxu0 }
0x103e   :  { %v4943_v53 = vadd.f32 %v4942_v50, %v4941_v49 }
0x103f   :  { %v4944_v51 = vpop.f32.mrf.mxu0 }
0x1040   :  { %v3770_v57 = vadd.f32 %v4943_v53, %v4562_v54 }
0x1041   :  { %v4945_v52 = vpop.f32.mrf.mxu0 }
0x1043   :  { %v4963_v55 = vpop.f32.mrf.mxu1 }
0x1045   :  { %v4964_v56 = vpop.f32.mrf.mxu1 }
0x1046   :  { %v4965_v58 = vadd.f32 %v4964_v56, %v4963_v55 }
0x1047   :  { %v4966_v59 = vpop.f32.mrf.mxu1 }
0x1048   :  { %v3810_v60 = vadd.f32 %v4965_v58, %v3770_v57 }
0x1049   :  { %v4967_v61 = vpop.f32.mrf.mxu1 }
0x104a   :  { %vm3815_vm15 = vcmp.ge.f32.partialorder %v3810_v60, 0.0  ;;  %v3816_v62 = vmul.f32 0.2, %v3810_v60 }
0x104c   :  { %v6234_v63 = vsel %vm3815_vm15, %v3810_v60, %v3816_v62 }
0x104d   :  { %v3818_v0 = vmul.f32 %v6234_v63, %v6234_v63 }
0x104f   :  { %4595 = vmatprep.subr.msk.mxu0 %vm3294_vm14, %v3818_v0 }
0x1050   :  { %4596 = vmatpush1.msk.msra.mxu0 %vm3294_vm14, %v6234_v63 }
0x1051   :  { %4597 = vmatmul.mubr.msk.f32.vlgmr.msra.gmra.mxu0 %vm3820_vm1, %v3819_v1  ;;  %5442 = vmatprep.subr.mxu0 %v5734_v4 }
0x1052   :  { %5443 = vmatpush3.msra.mxu0 %v6195_v34  ;;  %5474 = vmatprep.mubr.msk.f32.mxu0 %vm5735_vm6, %v5734_v4 }
0x1053   :  { %5444 = vmatprep.subr.mxu0 %v5734_v4 }
0x1054   :  { %5445 = vmatpush3.msra.mxu0 %v6197_v35  ;;  %v4303_v35 = vld [vmem:[#allocation4 + $0x2f8] sm:$0xf] }
0x1055   :  { %5446 = vmatprep.subr.mxu0 %v5734_v4 }
0x1056   :  { %5447 = vmatpush3.msra.mxu0 %v6201_v36 }
0x1057   :  { %5448 = vmatprep.subr.mxu0 %v5734_v4 }
0x1058   :  { %5449 = vmatpush3.msra.mxu0 %v6205_v37 }
0x1059   :  { %5450 = vmatprep.subr.mxu0 %v5734_v4 }
0x105a   :  { %5451 = vmatpush3.msra.mxu0 %v6209_v38  ;;  %v4305_v38 = vld [vmem:[#allocation4 + $0x300] sm:$0x3] }
0x105b   :  { %5452 = vmatprep.subr.mxu0 %v5734_v4 }
0x105c   :  { %5453 = vmatpush3.msra.mxu0 %v6213_v39 }
0x105d   :  { %5454 = vmatprep.subr.mxu0 %v5734_v4 }
0x105e   :  { %5455 = vmatpush3.msra.mxu0 %v6217_v40 }
0x105f   :  { %5456 = vmatprep.subr.mxu0 %v5734_v4 }
0x1060   :  { %5457 = vmatpush3.msra.mxu0 %v6221_v41 }
0x1061   :  { %5458 = vmatprep.subr.mxu0 %v5734_v4 }
0x1062   :  { %5459 = vmatpush3.msra.mxu0 %v3908_v42  ;;  %v4605_v42 = vld [vmem:[#allocation4 + $0x308] ss:$0 sm:$0xff] }
0x1063   :  { %5460 = vmatprep.subr.mxu0 %v5734_v4 }
0x1064   :  { %5461 = vmatpush3.msra.mxu0 %v3907_v43 }
0x1065   :  { %5462 = vmatprep.subr.mxu0 %v5734_v4 }
0x1066   :  { %5463 = vmatpush3.msra.mxu0 %v3906_v44 }
0x1067   :  { %5464 = vmatprep.subr.mxu0 %v5734_v4 }
0x1068   :  { %5465 = vmatpush3.msra.mxu0 %v3905_v45 }
0x1069   :  { %5466 = vmatprep.subr.mxu0 %v5734_v4 }
0x106a   :  { %5467 = vmatpush3.msra.mxu0 %v3904_v46 }
0x106b   :  { %5468 = vmatprep.subr.mxu0 %v5734_v4 }
0x106c   :  { %5469 = vmatpush3.msra.mxu0 %v3903_v47 }
0x106d   :  { %5470 = vmatprep.subr.mxu0 %v5734_v4 }
0x106e   :  { %5471 = vmatpush3.msra.mxu0 %v3902_v48 }
0x106f   :  { %5472 = vmatprep.subr.mxu0 %v5734_v4 }
0x1070   :  { %5473 = vmatpush3.msra.mxu0 %v3901_v2 }
0x1071   :  { %5496 = vmatprep.subr.mxu0 %v5734_v4 }
0x1111   :  { %v3896_v3 = vpop.f32.mrf.mxu0 }
0x1112   :  { %5440 = vmatmul.mubr.f32.vlgmr.msra.gmra.mxu1 %v3896_v3 }
0x1113   :  { %v3898_v5 = vpop.f32.mrf.mxu0  ;;  %5493 = vmatprep.mubr.msk.f32.mxu1 %vm5735_vm6, %v5734_v4  ;;  %5478 = vmatpush3.msra.mxu1 %v4071_v6 }
0x1114   :  { %5475 = vmatmul.mubr.f32.vlgmr.msra.gmra.mxu0 %v3898_v5  ;;  %5479 = vmatprep.subr.mxu1 %v5734_v4 }
0x1115   :  { %5512 = vmatprep.mubr.msk.f32.mxu0 %vm5735_vm6, %v5734_v4  ;;  %5497 = vmatpush3.msra.mxu0 %v4071_v6 }
0x1116   :  { %5498 = vmatprep.subr.mxu0 %v5734_v4  ;;  %5480 = vmatpush3.msra.mxu1 %v4070_v7 }
0x1117   :  { %5499 = vmatpush3.msra.mxu0 %v4070_v7  ;;  %5481 = vmatprep.subr.mxu1 %v5734_v4 }
0x1118   :  { %5500 = vmatprep.subr.mxu0 %v5734_v4  ;;  %5482 = vmatpush3.msra.mxu1 %v4069_v8 }
0x1119   :  { %5501 = vmatpush3.msra.mxu0 %v4069_v8  ;;  %5483 = vmatprep.subr.mxu1 %v5734_v4 }
0x111a   :  { %5502 = vmatprep.subr.mxu0 %v5734_v4  ;;  %5484 = vmatpush3.msra.mxu1 %v4068_v9 }
0x111b   :  { %5503 = vmatpush3.msra.mxu0 %v4068_v9  ;;  %5485 = vmatprep.subr.mxu1 %v5734_v4 }
0x111c   :  { %5504 = vmatprep.subr.mxu0 %v5734_v4  ;;  %5486 = vmatpush3.msra.mxu1 %v4067_v10 }
0x111d   :  { %5505 = vmatpush3.msra.mxu0 %v4067_v10  ;;  %5487 = vmatprep.subr.mxu1 %v5734_v4 }
0x111e   :  { %5506 = vmatprep.subr.mxu0 %v5734_v4  ;;  %5488 = vmatpush3.msra.mxu1 %v4066_v11 }
0x111f   :  { %5507 = vmatpush3.msra.mxu0 %v4066_v11  ;;  %5489 = vmatprep.subr.mxu1 %v5734_v4 }
0x1120   :  { %5508 = vmatprep.subr.mxu0 %v5734_v4  ;;  %5490 = vmatpush3.msra.mxu1 %v4065_v12 }
0x1121   :  { %5509 = vmatpush3.msra.mxu0 %v4065_v12  ;;  %5491 = vmatprep.subr.mxu1 %v5734_v4 }
0x1122   :  { %5510 = vmatprep.subr.mxu0 %v5734_v4  ;;  %5492 = vmatpush3.msra.mxu1 %v4064_v13 }
0x1123   :  { %5511 = vmatpush3.msra.mxu0 %v4064_v13 }
0x11d2   :  { %v3983_v14 = vpop.f32.mrf.mxu1 }
0x11d3   :  { %v3987_v15 = vmul.f32 0.25, %v3983_v14 }
0x11d4   :  { %v4054_v16 = vpop.f32.mrf.mxu0  ;;  %v5441_v17 = vpop.f32.mrf.mxu1 }
0x11d5   :  { %v4059_v18 = vmul.f32 %v3987_v15, %v3987_v15  ;;  %v4058_v19 = vmul.f32 0.25, %v4054_v16  ;;  %v4145_v24 = vsub.f32 0.0, %v3987_v15 }
0x11d6   :  { %v5476_v20 = vpop.f32.mrf.mxu0 }
0x11d7   :  { %v4060_v21 = vsub.f32 %v4058_v19, %v4059_v18 }
0x11d9   :  { %v4061_v22 = vmax.f32 %v4060_v21, 0.0 }
0x11db   :  { %v4062_v23 = vadd.f32 1e-05, %v4061_v22 }
0x11dd   :  { %5678 = vrsqrt.f32 %v4062_v23 }
0x11ea   :  { %v5679_v25 = vpop.eup %5678 }
0x11eb   :  { %5494 = vmatmul.mubr.msk.f32.vlgmr.msra.gmra.mxu1 %vm89_vm0, %v5679_v25  ;;  %v4146_v26 = vmul.f32 %v5679_v25, %v4145_v24 }
0x11ec   :  { %4294 = vmatprep.mubr.f32.mxu1 %v5734_v4 }
0x11ed   :  { %5513 = vmatmul.mubr.msk.f32.vlgmr.msra.gmra.mxu0 %vm89_vm0, %v4146_v26  ;;  %vm4397_vm0 = vcmask 1024  }
0x12ab   :  { %v4141_v27 = vpop.f32.mrf.mxu1 }
0x12ad   :  { %v4216_v28 = vpop.f32.mrf.mxu0  ;;  %v5495_v29 = vpop.f32.mrf.mxu1 }
0x12ae   :  { %4600 = vmatprep.subr.msk.mxu1 %vm1141_vm8, %v4216_v28 }
0x12af   :  { %v5514_v31 = vpop.f32.mrf.mxu0  ;;  %4601 = vmatpush1.msk.msra.mxu1 %vm1141_vm8, %v4141_v27 }
0x12b0   :  { %4602 = vmatmul.mubr.msk.f32.vlgmr.msra.gmra.mxu1 %vm1128_vm9, %v4220_v30  ;;  %5515 = vmatprep.subr.mxu1 %v5734_v4 }
0x12b1   :  { %5517 = vmatprep.mubr.msk.f32.mxu1 %vm5735_vm6, %v5734_v4 }
0x1370   :  { %v4296_v32 = vpop.f32.mrf.mxu1 }
0x1371   :  { %v4301_v33 = vmul.f32 %v4296_v32, %v6234_v63 }
0x1372   :  { %v4298_v34 = vpop.f32.mrf.mxu1 }
0x1373   :  { %v4302_v36 = vadd.f32 %v4301_v33, %v4298_v34 }
0x1375   :  { %v4304_v37 = vmul.f32 %v4303_v35, %v4302_v36 }
0x1377   :  { %5516 = vmatpush3.msk.msra.mxu1 %vm3294_vm14, %v4304_v37 }
0x1378   :  { %5518 = vmatmul.mubr.msk.f32.vlgmr.msra.gmra.mxu1 %vm3820_vm1, %v4305_v38 }
0x1438   :  { %v4378_v39 = vpop.f32.mrf.mxu1 }
0x1439   :  { %v4382_v40 = vsel %vm1141_vm8, %v4378_v39, 0.0 }
0x143a   :  { %v5519_v41 = vpop.f32.mrf.mxu1  ;;  %4383 = vadd.xlane.f32.xlu0 %v4382_v40 }
0x14c3   :  { %v4384_v43 = vpop.xlane.xlu0 %4383 }
0x14c4   :  { %v4390_v4 = vadd.f32 %v4605_v42, %v4384_v43 }
0x14c6   :  { %v4606_v44 = vmul.f32 -1.442695, %v4390_v4 }
0x14c8   :  { %5680 = vpow2.f32 %v4606_v44 }
0x14d5   :  { %v5681_v45 = vpop.eup %5680 }
0x14d6   :  { %v4394_v46 = vadd.f32 1.0, %v5681_v45 }
0x14d8   :  { %5682 = vrcp.f32 %v4394_v46 }
0x14e5   :  { %v5683_v47 = vpop.eup %5682 }
0x14e6   :  { %4398 = vst.msk [vmem:[%s6307_s3] sm:$0x3] %vm4397_vm0, %v5683_v47 }
0x14e7   :  { %4403 = vsyncpa [#allocation3], 1 }
0x14e8   :  { %4404 = vsyncpa [#allocation5], 1 }

</bundles_post_ra>
